<compile_context>
chip_gen: v7x
topology: tpu7x:2x2x1
jax: 0.10.0
libtpu: 0.0.40
codegen_flags: <defaults>
</compile_context>

<pallas_src>
import functools

import jax
import jax.numpy as jnp
from jax.experimental import pallas as pl
from jax.experimental.pallas import tpu as pltpu


# ------------------------------ Fused kernel ------------------------------- #

def _lsa_fused_kernel(scale_ref, x_q_ref, *rest, heads, dim_head, seq_len,
                      q_tile, separate_kv):
    """One (batch, query-tile) per grid step.

    scale_ref : SMEM (1,)              exp(temperature)   (scalar prefetch)
    x_q_ref   : VMEM (Tq, dim)  bf16   query rows of this tile
    x_kv_ref  : VMEM (N, dim)   bf16   full sequence (only when separate_kv)
    wq_ref    : VMEM (dim, inner)   bf16   pre-transposed
    wkv_ref   : VMEM (dim, 2*inner) bf16   pre-transposed (k then v)
    wout_ref  : VMEM (inner, dim)   bf16   pre-transposed
    bout_ref  : VMEM (1, dim)   f32
    o_ref     : VMEM (Tq, dim)
    """
    if separate_kv:
        x_kv_ref, wq_ref, wkv_ref, wout_ref, bout_ref, o_ref = rest
    else:
        wq_ref, wkv_ref, wout_ref, bout_ref, o_ref = rest
        x_kv_ref = x_q_ref

    f32 = jnp.float32
    bf16 = jnp.bfloat16
    inner = heads * dim_head
    dim = x_q_ref.shape[-1]

    mk_kn = (((1,), (0,)), ((), ()))   # (M,K) @ (K,N)
    mk_nk = (((1,), (1,)), ((), ()))   # (M,K) @ (N,K)^T   (QK^T)

    # q = (x_q @ Wq^T) * exp(temperature)        -> (Tq, inner)  f32
    q = jax.lax.dot_general(x_q_ref[...], wq_ref[...], mk_kn,
                            preferred_element_type=f32) * scale_ref[0]
    # kv = x_kv @ Wkv^T                          -> (N, 2*inner) f32
    kv = jax.lax.dot_general(x_kv_ref[...], wkv_ref[...], mk_kn,
                             preferred_element_type=f32)

    # Diagonal mask with the global query-row offset of this tile.
    q_row0 = pl.program_id(1) * q_tile
    row = jax.lax.broadcasted_iota(jnp.int32, (q_tile, seq_len), 0) + q_row0
    col = jax.lax.broadcasted_iota(jnp.int32, (q_tile, seq_len), 1)
    diag = row == col
    mask_value = -jnp.finfo(f32).max

    wout = wout_ref[...]                               # (inner, dim) bf16

    # Per-head contributions accumulate into a lane-dense (Tq, dim) f32 register
    # accumulator -- no VMEM scratch, no masked sub-128-lane stores.
    acc = jnp.zeros((q_tile, dim), f32)
    for h in range(heads):
        sl = slice(h * dim_head, (h + 1) * dim_head)
        qh = q[:, sl].astype(bf16)                     # (Tq, dh)
        kh = kv[:, sl].astype(bf16)                    # (N, dh)
        vh = kv[:, inner + h * dim_head:inner + (h + 1) * dim_head]

        # dots = qh @ kh^T  -> (Tq, N) f32 ; softmax math stays in f32.
        dots = jax.lax.dot_general(qh, kh, mk_nk, preferred_element_type=f32)
        dots = jnp.where(diag, mask_value, dots)
        dots = dots - jnp.max(dots, axis=-1, keepdims=True)
        e = jnp.exp(dots)
        attn = e * pl.reciprocal(jnp.sum(e, axis=-1, keepdims=True), approx=True)

        attn_out = jnp.dot(attn.astype(bf16), vh.astype(bf16),
                           preferred_element_type=f32)             # (Tq, dh)
        acc = acc + jax.lax.dot_general(attn_out.astype(bf16), wout[sl, :],
                                        mk_kn, preferred_element_type=f32)

    o_ref[...] = (acc + bout_ref[...]).astype(o_ref.dtype)


# -------------------------------- Wrapper ----------------------------------- #

def lsa_forward(x, params, heads, dim_head, q_tile=None):
    """Forward pass of LSA.

    x: (B, N, dim) float32
    params:
        w_qkv:       (3*inner, dim)   (PyTorch Linear layout: out x in)
        w_out:       (dim, inner)
        b_out:       (dim,)
        temperature: ()  scalar (log-scale parameter)
    """
    B, N, dim = x.shape
    inner = heads * dim_head

    if q_tile is None:
        q_tile = N if N <= 256 else (256 if N % 256 == 0 else N)
    q_tile = min(q_tile, N)
    assert N % q_tile == 0, "q_tile must divide N"
    n_q_tiles = N // q_tile
    separate_kv = n_q_tiles > 1

    # bf16 operands for the MXU; halves the weight/activation DMA bytes.
    cdt = jnp.bfloat16
    x_c = x.astype(cdt)
    w_qkv = params["w_qkv"]                                    # (3*inner, dim)
    wq_t = jnp.transpose(w_qkv[:inner, :]).astype(cdt)         # (dim, inner)
    wkv_t = jnp.transpose(w_qkv[inner:, :]).astype(cdt)        # (dim, 2*inner)
    wout_t = jnp.transpose(params["w_out"]).astype(cdt)        # (inner, dim)
    b_out = params["b_out"].reshape(1, dim).astype(jnp.float32)
    scale = jnp.exp(params["temperature"]).reshape(1).astype(jnp.float32)

    kernel = functools.partial(_lsa_fused_kernel, heads=heads, dim_head=dim_head,
                               seq_len=N, q_tile=q_tile, separate_kv=separate_kv)

    cost = pl.CostEstimate(
        flops=int(2 * B * N * (dim * 3 * inner + 2 * heads * N * dim_head + inner * dim)),
        transcendentals=int(B * heads * N * N),
        bytes_accessed=int(x_c.size * 2
                           + (wq_t.size + wkv_t.size + wout_t.size) * 2
                           + b_out.size * 4 + B * N * dim * 4))

    weight_bytes = (wq_t.size + wkv_t.size + wout_t.size) * 2 + b_out.size * 4
    block_bytes = (2 * q_tile * dim * 2                          # x_q (double-buffered)
                   + (2 * N * dim * 2 if separate_kv else 0)     # x_kv
                   + 2 * weight_bytes                            # weights (<=2 buffers)
                   + 2 * q_tile * dim * 4)                       # output
    interm_bytes = (q_tile * inner * 4 + N * 2 * inner * 4       # q, kv
                    + 2 * q_tile * N * 4                         # dots / exp
                    + q_tile * dim * 4)                          # acc
    vmem_limit = int(min(64 * 2 ** 20,
                         max(32 * 2 ** 20, 2 * (block_bytes + interm_bytes))))

    out_shape = jax.ShapeDtypeStruct((B, N, dim), x.dtype)

    def build(buffered_weights):
        def const_spec(shape):
            idx = lambda b, qi, s: tuple(0 for _ in shape)
            if buffered_weights:
                # Constant-index blocks don't need double buffers.
                return pl.BlockSpec(shape, idx, pipeline_mode=pl.Buffered(1))
            return pl.BlockSpec(shape, idx)

        in_specs = [pl.BlockSpec((None, q_tile, dim), lambda b, qi, s: (b, qi, 0))]
        if separate_kv:
            in_specs.append(pl.BlockSpec((None, N, dim), lambda b, qi, s: (b, 0, 0)))
        in_specs += [const_spec((dim, inner)), const_spec((dim, 2 * inner)),
                     const_spec((inner, dim)), const_spec((1, dim))]

        return pl.pallas_call(
            kernel,
            out_shape=out_shape,
            grid_spec=pltpu.PrefetchScalarGridSpec(
                num_scalar_prefetch=1,                 # exp(temperature) -> SMEM
                grid=(B, n_q_tiles),
                in_specs=in_specs,
                out_specs=pl.BlockSpec((None, q_tile, dim),
                                       lambda b, qi, s: (b, qi, 0)),
            ),
            compiler_params=pltpu.CompilerParams(
                dimension_semantics=("parallel", "parallel"),
                vmem_limit_bytes=vmem_limit),
            cost_estimate=cost,
        )

    args = (scale, x_c) + ((x_c,) if separate_kv else ()) + (wq_t, wkv_t, wout_t, b_out)
    try:
        return build(True)(*args)
    except Exception:
        # pipeline_mode=pl.Buffered(1) not supported by this JAX build -> default buffering.
        return build(False)(*args)


# ------------------------- Pure-JAX reference ------------------------------- #

def lsa_reference(x, params, heads, dim_head):
    B, N, dim = x.shape
    inner = heads * dim_head
    qkv = x @ params["w_qkv"].T
    q, k, v = jnp.split(qkv, 3, axis=-1)
    sh = lambda t: t.reshape(B, N, heads, dim_head).transpose(0, 2, 1, 3)
    q, k, v = sh(q), sh(k), sh(v)
    dots = jnp.einsum("bhnd,bhmd->bhnm", q, k,
                      preferred_element_type=jnp.float32) * jnp.exp(params["temperature"])
    eye = jnp.eye(N, dtype=bool)
    dots = jnp.where(eye, -jnp.finfo(dots.dtype).max, dots)
    attn = jax.nn.softmax(dots, axis=-1)
    out = jnp.einsum("bhnm,bhmd->bhnd", attn, v)
    out = out.transpose(0, 2, 1, 3).reshape(B, N, inner)
    return out @ params["w_out"].T + params["b_out"]


# ---------------------------------- Main ------------------------------------ #

if __name__ == "__main__":
    def run_case(key, B, N, dim, heads, dim_head, tag):
        inner = heads * dim_head
        kx, kq, ko, kb = jax.random.split(key, 4)
        x = jax.random.normal(kx, (B, N, dim), dtype=jnp.float32)
        params = {
            "w_qkv": 0.05 * jax.random.normal(kq, (3 * inner, dim), dtype=jnp.float32),
            "w_out": 0.05 * jax.random.normal(ko, (dim, inner), dtype=jnp.float32),
            "b_out": 0.01 * jax.random.normal(kb, (dim,), dtype=jnp.float32),
            # nn.Parameter(torch.log(torch.tensor(dim_head ** -0.5)))
            "temperature": jnp.log(jnp.asarray(dim_head ** -0.5, dtype=jnp.float32)),
        }
        y = jax.block_until_ready(lsa_forward(x, params, heads, dim_head))
        y_ref = lsa_reference(x, params, heads, dim_head)
        assert y.shape == (B, N, dim)
        # bf16 MXU operands + approx reciprocal -> ~1e-3 abs error at these scales.
        assert jnp.allclose(y, y_ref, rtol=1e-2, atol=1e-2), f"mismatch vs reference ({tag})"

    key = jax.random.PRNGKey(0)
    k1, k2 = jax.random.split(key)
    # Small, module-consistent shapes (single query tile path).
    run_case(k1, B=2, N=8, dim=32, heads=4, dim_head=8, tag="small")
    # Exercise the query-tiling / megacore load-balancing path (grid = (B, N//256)).
    run_case(k2, B=1, N=512, dim=32, heads=4, dim_head=8, tag="q-tiled")

    print("KERNEL_OK")
</pallas_src>

<mosaic_0001>
module attributes {stable_mosaic.version = 11 : i64} {
  func.func @_lsa_fused_kernel(%arg0: i32, %arg1: i32, %arg2: memref<1xf32, #tpu.memory_space<smem>>, %arg3: memref<1x8x32xbf16, #tpu.memory_space<vmem>>, %arg4: memref<32x32xbf16, #tpu.memory_space<vmem>>, %arg5: memref<32x64xbf16, #tpu.memory_space<vmem>>, %arg6: memref<32x32xbf16, #tpu.memory_space<vmem>>, %arg7: memref<1x32xf32, #tpu.memory_space<vmem>>, %arg8: memref<1x8x32xf32, #tpu.memory_space<vmem>>) attributes {dimension_semantics = [#tpu.dimension_semantics<parallel>, #tpu.dimension_semantics<parallel>], iteration_bounds = array<i64: 2, 1>, scalar_prefetch = 1 : i64, scratch_operands = 0 : i64, tpu.core_type = #tpu.core_type<tc>, window_params = [{transform_indices = @transform_0, window_bounds = array<i64: 1, 8, 32>}, {pipeline_mode = #tpu.pipeline_mode<synchronous>, transform_indices = @transform_1, window_bounds = array<i64: 32, 32>}, {pipeline_mode = #tpu.pipeline_mode<synchronous>, transform_indices = @transform_2, window_bounds = array<i64: 32, 64>}, {pipeline_mode = #tpu.pipeline_mode<synchronous>, transform_indices = @transform_3, window_bounds = array<i64: 32, 32>}, {pipeline_mode = #tpu.pipeline_mode<synchronous>, transform_indices = @transform_4, window_bounds = array<i64: 1, 32>}, {transform_indices = @transform_5, window_bounds = array<i64: 1, 8, 32>}]} {
    %c0 = arith.constant 0 : index
    %c0_0 = arith.constant 0 : index
    %c0_1 = arith.constant 0 : index
    %0 = vector.load %arg3[%c0, %c0_0, %c0_1] : memref<1x8x32xbf16, #tpu.memory_space<vmem>>, vector<1x8x32xbf16>
    %1 = vector.shape_cast %0 : vector<1x8x32xbf16> to vector<8x32xbf16>
    %c0_2 = arith.constant 0 : index
    %c0_3 = arith.constant 0 : index
    %2 = vector.load %arg4[%c0_2, %c0_3] : memref<32x32xbf16, #tpu.memory_space<vmem>>, vector<32x32xbf16>
    %cst = arith.constant dense<0.000000e+00> : vector<8x32xf32>
    %3 = tpu.matmul %1, %2, %cst {dimension_numbers = #tpu.dot_dimension_numbers<[1], [0], [0], [1], [0, 0, 1, 1], [], []>} : vector<8x32xbf16>, vector<32x32xbf16>, vector<8x32xf32> -> vector<8x32xf32>
    %c0_4 = arith.constant 0 : index
    %4 = memref.load %arg2[%c0_4] : memref<1xf32, #tpu.memory_space<smem>>
    %5 = vector.broadcast %4 : f32 to vector<8x32xf32>
    %6 = arith.mulf %3, %5 : vector<8x32xf32>
    %c0_5 = arith.constant 0 : index
    %c0_6 = arith.constant 0 : index
    %c0_7 = arith.constant 0 : index
    %7 = vector.load %arg3[%c0_5, %c0_6, %c0_7] : memref<1x8x32xbf16, #tpu.memory_space<vmem>>, vector<1x8x32xbf16>
    %8 = vector.shape_cast %7 : vector<1x8x32xbf16> to vector<8x32xbf16>
    %c0_8 = arith.constant 0 : index
    %c0_9 = arith.constant 0 : index
    %9 = vector.load %arg5[%c0_8, %c0_9] : memref<32x64xbf16, #tpu.memory_space<vmem>>, vector<32x64xbf16>
    %cst_10 = arith.constant dense<0.000000e+00> : vector<8x64xf32>
    %10 = tpu.matmul %8, %9, %cst_10 {dimension_numbers = #tpu.dot_dimension_numbers<[1], [0], [0], [1], [0, 0, 1, 1], [], []>} : vector<8x32xbf16>, vector<32x64xbf16>, vector<8x64xf32> -> vector<8x64xf32>
    %c8_i32 = arith.constant 8 : i32
    %11 = arith.muli %arg1, %c8_i32 : i32
    %12 = tpu.iota {dimensions = array<i32: 0>} : vector<8x8xi32>
    %13 = vector.broadcast %11 : i32 to vector<8x8xi32>
    %14 = arith.addi %12, %13 : vector<8x8xi32>
    %15 = tpu.iota {dimensions = array<i32: 1>} : vector<8x8xi32>
    %16 = arith.cmpi eq, %14, %15 : vector<8x8xi32>
    %c0_11 = arith.constant 0 : index
    %c0_12 = arith.constant 0 : index
    %17 = vector.load %arg6[%c0_11, %c0_12] : memref<32x32xbf16, #tpu.memory_space<vmem>>, vector<32x32xbf16>
    %cst_13 = arith.constant 0.000000e+00 : f32
    %18 = vector.broadcast %cst_13 : f32 to vector<8x32xf32>
    %19 = vector.extract_strided_slice %6 {offsets = [0, 0], sizes = [8, 8], strides = [1, 1]} : vector<8x32xf32> to vector<8x8xf32>
    %20 = arith.truncf %19 : vector<8x8xf32> to vector<8x8xbf16>
    %21 = vector.extract_strided_slice %10 {offsets = [0, 0], sizes = [8, 8], strides = [1, 1]} : vector<8x64xf32> to vector<8x8xf32>
    %22 = arith.truncf %21 : vector<8x8xf32> to vector<8x8xbf16>
    %23 = vector.extract_strided_slice %10 {offsets = [0, 32], sizes = [8, 8], strides = [1, 1]} : vector<8x64xf32> to vector<8x8xf32>
    %cst_14 = arith.constant dense<0.000000e+00> : vector<8x8xf32>
    %24 = tpu.matmul %20, %22, %cst_14 {dimension_numbers = #tpu.dot_dimension_numbers<[1], [1], [0], [0], [0, 0, 1, 0], [], []>} : vector<8x8xbf16>, vector<8x8xbf16>, vector<8x8xf32> -> vector<8x8xf32>
    %cst_15 = arith.constant -3.40282347E+38 : f32
    %25 = vector.broadcast %cst_15 : f32 to vector<8x8xf32>
    %26 = arith.select %16, %25, %24 : vector<8x8xi1>, vector<8x8xf32>
    %cst_16 = arith.constant dense<0xFF800000> : vector<8xf32>
    %27 = vector.multi_reduction <maximumf>, %26, %cst_16 [1] : vector<8x8xf32> to vector<8xf32>
    %28 = vector.shape_cast %27 : vector<8xf32> to vector<8x1xf32>
    %29 = vector.broadcast %28 : vector<8x1xf32> to vector<8x8xf32>
    %30 = arith.subf %26, %29 : vector<8x8xf32>
    %31 = math.exp %30 : vector<8x8xf32>
    %cst_17 = arith.constant dense<0.000000e+00> : vector<8xf32>
    %32 = vector.multi_reduction <add>, %31, %cst_17 [1] : vector<8x8xf32> to vector<8xf32>
    %33 = vector.shape_cast %32 : vector<8xf32> to vector<8x1xf32>
    %34 = tpu.reciprocal %33 {approx = true} : vector<8x1xf32> -> vector<8x1xf32>
    %35 = vector.broadcast %34 : vector<8x1xf32> to vector<8x8xf32>
    %36 = arith.mulf %31, %35 : vector<8x8xf32>
    %37 = arith.truncf %36 : vector<8x8xf32> to vector<8x8xbf16>
    %38 = arith.truncf %23 : vector<8x8xf32> to vector<8x8xbf16>
    %cst_18 = arith.constant dense<0.000000e+00> : vector<8x8xf32>
    %39 = tpu.matmul %37, %38, %cst_18 {dimension_numbers = #tpu.dot_dimension_numbers<[1], [0], [0], [1], [0, 0, 1, 1], [], []>} : vector<8x8xbf16>, vector<8x8xbf16>, vector<8x8xf32> -> vector<8x8xf32>
    %40 = arith.truncf %39 : vector<8x8xf32> to vector<8x8xbf16>
    %41 = vector.extract_strided_slice %17 {offsets = [0, 0], sizes = [8, 32], strides = [1, 1]} : vector<32x32xbf16> to vector<8x32xbf16>
    %cst_19 = arith.constant dense<0.000000e+00> : vector<8x32xf32>
    %42 = tpu.matmul %40, %41, %cst_19 {dimension_numbers = #tpu.dot_dimension_numbers<[1], [0], [0], [1], [0, 0, 1, 1], [], []>} : vector<8x8xbf16>, vector<8x32xbf16>, vector<8x32xf32> -> vector<8x32xf32>
    %43 = arith.addf %18, %42 : vector<8x32xf32>
    %44 = vector.extract_strided_slice %6 {offsets = [0, 8], sizes = [8, 8], strides = [1, 1]} : vector<8x32xf32> to vector<8x8xf32>
    %45 = arith.truncf %44 : vector<8x8xf32> to vector<8x8xbf16>
    %46 = vector.extract_strided_slice %10 {offsets = [0, 8], sizes = [8, 8], strides = [1, 1]} : vector<8x64xf32> to vector<8x8xf32>
    %47 = arith.truncf %46 : vector<8x8xf32> to vector<8x8xbf16>
    %48 = vector.extract_strided_slice %10 {offsets = [0, 40], sizes = [8, 8], strides = [1, 1]} : vector<8x64xf32> to vector<8x8xf32>
    %cst_20 = arith.constant dense<0.000000e+00> : vector<8x8xf32>
    %49 = tpu.matmul %45, %47, %cst_20 {dimension_numbers = #tpu.dot_dimension_numbers<[1], [1], [0], [0], [0, 0, 1, 0], [], []>} : vector<8x8xbf16>, vector<8x8xbf16>, vector<8x8xf32> -> vector<8x8xf32>
    %cst_21 = arith.constant -3.40282347E+38 : f32
    %50 = vector.broadcast %cst_21 : f32 to vector<8x8xf32>
    %51 = arith.select %16, %50, %49 : vector<8x8xi1>, vector<8x8xf32>
    %cst_22 = arith.constant dense<0xFF800000> : vector<8xf32>
    %52 = vector.multi_reduction <maximumf>, %51, %cst_22 [1] : vector<8x8xf32> to vector<8xf32>
    %53 = vector.shape_cast %52 : vector<8xf32> to vector<8x1xf32>
    %54 = vector.broadcast %53 : vector<8x1xf32> to vector<8x8xf32>
    %55 = arith.subf %51, %54 : vector<8x8xf32>
    %56 = math.exp %55 : vector<8x8xf32>
    %cst_23 = arith.constant dense<0.000000e+00> : vector<8xf32>
    %57 = vector.multi_reduction <add>, %56, %cst_23 [1] : vector<8x8xf32> to vector<8xf32>
    %58 = vector.shape_cast %57 : vector<8xf32> to vector<8x1xf32>
    %59 = tpu.reciprocal %58 {approx = true} : vector<8x1xf32> -> vector<8x1xf32>
    %60 = vector.broadcast %59 : vector<8x1xf32> to vector<8x8xf32>
    %61 = arith.mulf %56, %60 : vector<8x8xf32>
    %62 = arith.truncf %61 : vector<8x8xf32> to vector<8x8xbf16>
    %63 = arith.truncf %48 : vector<8x8xf32> to vector<8x8xbf16>
    %cst_24 = arith.constant dense<0.000000e+00> : vector<8x8xf32>
    %64 = tpu.matmul %62, %63, %cst_24 {dimension_numbers = #tpu.dot_dimension_numbers<[1], [0], [0], [1], [0, 0, 1, 1], [], []>} : vector<8x8xbf16>, vector<8x8xbf16>, vector<8x8xf32> -> vector<8x8xf32>
    %65 = arith.truncf %64 : vector<8x8xf32> to vector<8x8xbf16>
    %66 = vector.extract_strided_slice %17 {offsets = [8, 0], sizes = [8, 32], strides = [1, 1]} : vector<32x32xbf16> to vector<8x32xbf16>
    %cst_25 = arith.constant dense<0.000000e+00> : vector<8x32xf32>
    %67 = tpu.matmul %65, %66, %cst_25 {dimension_numbers = #tpu.dot_dimension_numbers<[1], [0], [0], [1], [0, 0, 1, 1], [], []>} : vector<8x8xbf16>, vector<8x32xbf16>, vector<8x32xf32> -> vector<8x32xf32>
    %68 = arith.addf %43, %67 : vector<8x32xf32>
    %69 = vector.extract_strided_slice %6 {offsets = [0, 16], sizes = [8, 8], strides = [1, 1]} : vector<8x32xf32> to vector<8x8xf32>
    %70 = arith.truncf %69 : vector<8x8xf32> to vector<8x8xbf16>
    %71 = vector.extract_strided_slice %10 {offsets = [0, 16], sizes = [8, 8], strides = [1, 1]} : vector<8x64xf32> to vector<8x8xf32>
    %72 = arith.truncf %71 : vector<8x8xf32> to vector<8x8xbf16>
    %73 = vector.extract_strided_slice %10 {offsets = [0, 48], sizes = [8, 8], strides = [1, 1]} : vector<8x64xf32> to vector<8x8xf32>
    %cst_26 = arith.constant dense<0.000000e+00> : vector<8x8xf32>
    %74 = tpu.matmul %70, %72, %cst_26 {dimension_numbers = #tpu.dot_dimension_numbers<[1], [1], [0], [0], [0, 0, 1, 0], [], []>} : vector<8x8xbf16>, vector<8x8xbf16>, vector<8x8xf32> -> vector<8x8xf32>
    %cst_27 = arith.constant -3.40282347E+38 : f32
    %75 = vector.broadcast %cst_27 : f32 to vector<8x8xf32>
    %76 = arith.select %16, %75, %74 : vector<8x8xi1>, vector<8x8xf32>
    %cst_28 = arith.constant dense<0xFF800000> : vector<8xf32>
    %77 = vector.multi_reduction <maximumf>, %76, %cst_28 [1] : vector<8x8xf32> to vector<8xf32>
    %78 = vector.shape_cast %77 : vector<8xf32> to vector<8x1xf32>
    %79 = vector.broadcast %78 : vector<8x1xf32> to vector<8x8xf32>
    %80 = arith.subf %76, %79 : vector<8x8xf32>
    %81 = math.exp %80 : vector<8x8xf32>
    %cst_29 = arith.constant dense<0.000000e+00> : vector<8xf32>
    %82 = vector.multi_reduction <add>, %81, %cst_29 [1] : vector<8x8xf32> to vector<8xf32>
    %83 = vector.shape_cast %82 : vector<8xf32> to vector<8x1xf32>
    %84 = tpu.reciprocal %83 {approx = true} : vector<8x1xf32> -> vector<8x1xf32>
    %85 = vector.broadcast %84 : vector<8x1xf32> to vector<8x8xf32>
    %86 = arith.mulf %81, %85 : vector<8x8xf32>
    %87 = arith.truncf %86 : vector<8x8xf32> to vector<8x8xbf16>
    %88 = arith.truncf %73 : vector<8x8xf32> to vector<8x8xbf16>
    %cst_30 = arith.constant dense<0.000000e+00> : vector<8x8xf32>
    %89 = tpu.matmul %87, %88, %cst_30 {dimension_numbers = #tpu.dot_dimension_numbers<[1], [0], [0], [1], [0, 0, 1, 1], [], []>} : vector<8x8xbf16>, vector<8x8xbf16>, vector<8x8xf32> -> vector<8x8xf32>
    %90 = arith.truncf %89 : vector<8x8xf32> to vector<8x8xbf16>
    %91 = vector.extract_strided_slice %17 {offsets = [16, 0], sizes = [8, 32], strides = [1, 1]} : vector<32x32xbf16> to vector<8x32xbf16>
    %cst_31 = arith.constant dense<0.000000e+00> : vector<8x32xf32>
    %92 = tpu.matmul %90, %91, %cst_31 {dimension_numbers = #tpu.dot_dimension_numbers<[1], [0], [0], [1], [0, 0, 1, 1], [], []>} : vector<8x8xbf16>, vector<8x32xbf16>, vector<8x32xf32> -> vector<8x32xf32>
    %93 = arith.addf %68, %92 : vector<8x32xf32>
    %94 = vector.extract_strided_slice %6 {offsets = [0, 24], sizes = [8, 8], strides = [1, 1]} : vector<8x32xf32> to vector<8x8xf32>
    %95 = arith.truncf %94 : vector<8x8xf32> to vector<8x8xbf16>
    %96 = vector.extract_strided_slice %10 {offsets = [0, 24], sizes = [8, 8], strides = [1, 1]} : vector<8x64xf32> to vector<8x8xf32>
    %97 = arith.truncf %96 : vector<8x8xf32> to vector<8x8xbf16>
    %98 = vector.extract_strided_slice %10 {offsets = [0, 56], sizes = [8, 8], strides = [1, 1]} : vector<8x64xf32> to vector<8x8xf32>
    %cst_32 = arith.constant dense<0.000000e+00> : vector<8x8xf32>
    %99 = tpu.matmul %95, %97, %cst_32 {dimension_numbers = #tpu.dot_dimension_numbers<[1], [1], [0], [0], [0, 0, 1, 0], [], []>} : vector<8x8xbf16>, vector<8x8xbf16>, vector<8x8xf32> -> vector<8x8xf32>
    %cst_33 = arith.constant -3.40282347E+38 : f32
    %100 = vector.broadcast %cst_33 : f32 to vector<8x8xf32>
    %101 = arith.select %16, %100, %99 : vector<8x8xi1>, vector<8x8xf32>
    %cst_34 = arith.constant dense<0xFF800000> : vector<8xf32>
    %102 = vector.multi_reduction <maximumf>, %101, %cst_34 [1] : vector<8x8xf32> to vector<8xf32>
    %103 = vector.shape_cast %102 : vector<8xf32> to vector<8x1xf32>
    %104 = vector.broadcast %103 : vector<8x1xf32> to vector<8x8xf32>
    %105 = arith.subf %101, %104 : vector<8x8xf32>
    %106 = math.exp %105 : vector<8x8xf32>
    %cst_35 = arith.constant dense<0.000000e+00> : vector<8xf32>
    %107 = vector.multi_reduction <add>, %106, %cst_35 [1] : vector<8x8xf32> to vector<8xf32>
    %108 = vector.shape_cast %107 : vector<8xf32> to vector<8x1xf32>
    %109 = tpu.reciprocal %108 {approx = true} : vector<8x1xf32> -> vector<8x1xf32>
    %110 = vector.broadcast %109 : vector<8x1xf32> to vector<8x8xf32>
    %111 = arith.mulf %106, %110 : vector<8x8xf32>
    %112 = arith.truncf %111 : vector<8x8xf32> to vector<8x8xbf16>
    %113 = arith.truncf %98 : vector<8x8xf32> to vector<8x8xbf16>
    %cst_36 = arith.constant dense<0.000000e+00> : vector<8x8xf32>
    %114 = tpu.matmul %112, %113, %cst_36 {dimension_numbers = #tpu.dot_dimension_numbers<[1], [0], [0], [1], [0, 0, 1, 1], [], []>} : vector<8x8xbf16>, vector<8x8xbf16>, vector<8x8xf32> -> vector<8x8xf32>
    %115 = arith.truncf %114 : vector<8x8xf32> to vector<8x8xbf16>
    %116 = vector.extract_strided_slice %17 {offsets = [24, 0], sizes = [8, 32], strides = [1, 1]} : vector<32x32xbf16> to vector<8x32xbf16>
    %cst_37 = arith.constant dense<0.000000e+00> : vector<8x32xf32>
    %117 = tpu.matmul %115, %116, %cst_37 {dimension_numbers = #tpu.dot_dimension_numbers<[1], [0], [0], [1], [0, 0, 1, 1], [], []>} : vector<8x8xbf16>, vector<8x32xbf16>, vector<8x32xf32> -> vector<8x32xf32>
    %118 = arith.addf %93, %117 : vector<8x32xf32>
    %c0_38 = arith.constant 0 : index
    %c0_39 = arith.constant 0 : index
    %119 = vector.load %arg7[%c0_38, %c0_39] : memref<1x32xf32, #tpu.memory_space<vmem>>, vector<1x32xf32>
    %120 = vector.broadcast %119 : vector<1x32xf32> to vector<8x32xf32>
    %121 = arith.addf %118, %120 : vector<8x32xf32>
    %c0_40 = arith.constant 0 : index
    %c0_41 = arith.constant 0 : index
    %c0_42 = arith.constant 0 : index
    %122 = vector.load %arg8[%c0_40, %c0_41, %c0_42] : memref<1x8x32xf32, #tpu.memory_space<vmem>>, vector<1x8x32xf32>
    %123 = vector.shape_cast %122 : vector<1x8x32xf32> to vector<8x32xf32>
    %124 = vector.shape_cast %121 : vector<8x32xf32> to vector<1x8x32xf32>
    tpu.vector_store %arg8[%c0_40, %c0_41, %c0_42], %124 {strides = array<i32>} : memref<1x8x32xf32, #tpu.memory_space<vmem>>, vector<1x8x32xf32>,
    return
  }
  func.func @transform_0(%arg0: i32, %arg1: i32, %arg2: memref<1xf32, #tpu.memory_space<smem>>) -> (i32, i32, i32) {
    %c0_i32 = arith.constant 0 : i32
    %c0_i32_0 = arith.constant 0 : i32
    return %arg0, %arg1, %c0_i32 : i32, i32, i32
  }
  func.func @transform_1(%arg0: i32, %arg1: i32, %arg2: memref<1xf32, #tpu.memory_space<smem>>) -> (i32, i32) {
    %c0_i32 = arith.constant 0 : i32
    %c0_i32_0 = arith.constant 0 : i32
    %c0_i32_1 = arith.constant 0 : i32
    return %c0_i32, %c0_i32_0 : i32, i32
  }
  func.func @transform_2(%arg0: i32, %arg1: i32, %arg2: memref<1xf32, #tpu.memory_space<smem>>) -> (i32, i32) {
    %c0_i32 = arith.constant 0 : i32
    %c0_i32_0 = arith.constant 0 : i32
    %c0_i32_1 = arith.constant 0 : i32
    return %c0_i32, %c0_i32_0 : i32, i32
  }
  func.func @transform_3(%arg0: i32, %arg1: i32, %arg2: memref<1xf32, #tpu.memory_space<smem>>) -> (i32, i32) {
    %c0_i32 = arith.constant 0 : i32
    %c0_i32_0 = arith.constant 0 : i32
    %c0_i32_1 = arith.constant 0 : i32
    return %c0_i32, %c0_i32_0 : i32, i32
  }
  func.func @transform_4(%arg0: i32, %arg1: i32, %arg2: memref<1xf32, #tpu.memory_space<smem>>) -> (i32, i32) {
    %c0_i32 = arith.constant 0 : i32
    %c0_i32_0 = arith.constant 0 : i32
    %c0_i32_1 = arith.constant 0 : i32
    return %c0_i32, %c0_i32_0 : i32, i32
  }
  func.func @transform_5(%arg0: i32, %arg1: i32, %arg2: memref<1xf32, #tpu.memory_space<smem>>) -> (i32, i32, i32) {
    %c0_i32 = arith.constant 0 : i32
    %c0_i32_0 = arith.constant 0 : i32
    return %arg0, %arg1, %c0_i32 : i32, i32, i32
  }
}

module attributes {stable_mosaic.version = 11 : i64} {
  func.func @_lsa_fused_kernel(%arg0: i32, %arg1: i32, %arg2: memref<1xf32, #tpu.memory_space<smem>>, %arg3: memref<1x8x32xbf16, #tpu.memory_space<vmem>>, %arg4: memref<32x32xbf16, #tpu.memory_space<vmem>>, %arg5: memref<32x64xbf16, #tpu.memory_space<vmem>>, %arg6: memref<32x32xbf16, #tpu.memory_space<vmem>>, %arg7: memref<1x32xf32, #tpu.memory_space<vmem>>, %arg8: memref<1x8x32xf32, #tpu.memory_space<vmem>>) attributes {dimension_semantics = [#tpu.dimension_semantics<parallel>, #tpu.dimension_semantics<parallel>], iteration_bounds = array<i64: 2, 1>, scalar_prefetch = 1 : i64, scratch_operands = 0 : i64, tpu.core_type = #tpu.core_type<tc>, window_params = [{transform_indices = @transform_0, window_bounds = array<i64: 1, 8, 32>}, {pipeline_mode = #tpu.pipeline_mode<synchronous>, transform_indices = @transform_1, window_bounds = array<i64: 32, 32>}, {pipeline_mode = #tpu.pipeline_mode<synchronous>, transform_indices = @transform_2, window_bounds = array<i64: 32, 64>}, {pipeline_mode = #tpu.pipeline_mode<synchronous>, transform_indices = @transform_3, window_bounds = array<i64: 32, 32>}, {pipeline_mode = #tpu.pipeline_mode<synchronous>, transform_indices = @transform_4, window_bounds = array<i64: 1, 32>}, {transform_indices = @transform_5, window_bounds = array<i64: 1, 8, 32>}]} {
    %c0 = arith.constant 0 : index
    %c0_0 = arith.constant 0 : index
    %c0_1 = arith.constant 0 : index
    %0 = vector.load %arg3[%c0, %c0_0, %c0_1] : memref<1x8x32xbf16, #tpu.memory_space<vmem>>, vector<1x8x32xbf16>
    %1 = vector.shape_cast %0 : vector<1x8x32xbf16> to vector<8x32xbf16>
    %c0_2 = arith.constant 0 : index
    %c0_3 = arith.constant 0 : index
    %2 = vector.load %arg4[%c0_2, %c0_3] : memref<32x32xbf16, #tpu.memory_space<vmem>>, vector<32x32xbf16>
    %cst = arith.constant dense<0.000000e+00> : vector<8x32xf32>
    %3 = tpu.matmul %1, %2, %cst {dimension_numbers = #tpu.dot_dimension_numbers<[1], [0], [0], [1], [0, 0, 1, 1], [], []>} : vector<8x32xbf16>, vector<32x32xbf16>, vector<8x32xf32> -> vector<8x32xf32>
    %c0_4 = arith.constant 0 : index
    %4 = memref.load %arg2[%c0_4] : memref<1xf32, #tpu.memory_space<smem>>
    %5 = vector.broadcast %4 : f32 to vector<8x32xf32>
    %6 = arith.mulf %3, %5 : vector<8x32xf32>
    %c0_5 = arith.constant 0 : index
    %c0_6 = arith.constant 0 : index
    %c0_7 = arith.constant 0 : index
    %7 = vector.load %arg3[%c0_5, %c0_6, %c0_7] : memref<1x8x32xbf16, #tpu.memory_space<vmem>>, vector<1x8x32xbf16>
    %8 = vector.shape_cast %7 : vector<1x8x32xbf16> to vector<8x32xbf16>
    %c0_8 = arith.constant 0 : index
    %c0_9 = arith.constant 0 : index
    %9 = vector.load %arg5[%c0_8, %c0_9] : memref<32x64xbf16, #tpu.memory_space<vmem>>, vector<32x64xbf16>
    %cst_10 = arith.constant dense<0.000000e+00> : vector<8x64xf32>
    %10 = tpu.matmul %8, %9, %cst_10 {dimension_numbers = #tpu.dot_dimension_numbers<[1], [0], [0], [1], [0, 0, 1, 1], [], []>} : vector<8x32xbf16>, vector<32x64xbf16>, vector<8x64xf32> -> vector<8x64xf32>
    %c8_i32 = arith.constant 8 : i32
    %11 = arith.muli %arg1, %c8_i32 : i32
    %12 = tpu.iota {dimensions = array<i32: 0>} : vector<8x8xi32>
    %13 = vector.broadcast %11 : i32 to vector<8x8xi32>
    %14 = arith.addi %12, %13 : vector<8x8xi32>
    %15 = tpu.iota {dimensions = array<i32: 1>} : vector<8x8xi32>
    %16 = arith.cmpi eq, %14, %15 : vector<8x8xi32>
    %c0_11 = arith.constant 0 : index
    %c0_12 = arith.constant 0 : index
    %17 = vector.load %arg6[%c0_11, %c0_12] : memref<32x32xbf16, #tpu.memory_space<vmem>>, vector<32x32xbf16>
    %cst_13 = arith.constant 0.000000e+00 : f32
    %18 = vector.broadcast %cst_13 : f32 to vector<8x32xf32>
    %19 = vector.extract_strided_slice %6 {offsets = [0, 0], sizes = [8, 8], strides = [1, 1]} : vector<8x32xf32> to vector<8x8xf32>
    %20 = arith.truncf %19 : vector<8x8xf32> to vector<8x8xbf16>
    %21 = vector.extract_strided_slice %10 {offsets = [0, 0], sizes = [8, 8], strides = [1, 1]} : vector<8x64xf32> to vector<8x8xf32>
    %22 = arith.truncf %21 : vector<8x8xf32> to vector<8x8xbf16>
    %23 = vector.extract_strided_slice %10 {offsets = [0, 32], sizes = [8, 8], strides = [1, 1]} : vector<8x64xf32> to vector<8x8xf32>
    %cst_14 = arith.constant dense<0.000000e+00> : vector<8x8xf32>
    %24 = tpu.matmul %20, %22, %cst_14 {dimension_numbers = #tpu.dot_dimension_numbers<[1], [1], [0], [0], [0, 0, 1, 0], [], []>} : vector<8x8xbf16>, vector<8x8xbf16>, vector<8x8xf32> -> vector<8x8xf32>
    %cst_15 = arith.constant -3.40282347E+38 : f32
    %25 = vector.broadcast %cst_15 : f32 to vector<8x8xf32>
    %26 = arith.select %16, %25, %24 : vector<8x8xi1>, vector<8x8xf32>
    %cst_16 = arith.constant dense<0xFF800000> : vector<8xf32>
    %27 = vector.multi_reduction <maximumf>, %26, %cst_16 [1] : vector<8x8xf32> to vector<8xf32>
    %28 = vector.shape_cast %27 : vector<8xf32> to vector<8x1xf32>
    %29 = vector.broadcast %28 : vector<8x1xf32> to vector<8x8xf32>
    %30 = arith.subf %26, %29 : vector<8x8xf32>
    %31 = math.exp %30 : vector<8x8xf32>
    %cst_17 = arith.constant dense<0.000000e+00> : vector<8xf32>
    %32 = vector.multi_reduction <add>, %31, %cst_17 [1] : vector<8x8xf32> to vector<8xf32>
    %33 = vector.shape_cast %32 : vector<8xf32> to vector<8x1xf32>
    %34 = tpu.reciprocal %33 {approx = true} : vector<8x1xf32> -> vector<8x1xf32>
    %35 = vector.broadcast %34 : vector<8x1xf32> to vector<8x8xf32>
    %36 = arith.mulf %31, %35 : vector<8x8xf32>
    %37 = arith.truncf %36 : vector<8x8xf32> to vector<8x8xbf16>
    %38 = arith.truncf %23 : vector<8x8xf32> to vector<8x8xbf16>
    %cst_18 = arith.constant dense<0.000000e+00> : vector<8x8xf32>
    %39 = tpu.matmul %37, %38, %cst_18 {dimension_numbers = #tpu.dot_dimension_numbers<[1], [0], [0], [1], [0, 0, 1, 1], [], []>} : vector<8x8xbf16>, vector<8x8xbf16>, vector<8x8xf32> -> vector<8x8xf32>
    %40 = arith.truncf %39 : vector<8x8xf32> to vector<8x8xbf16>
    %41 = vector.extract_strided_slice %17 {offsets = [0, 0], sizes = [8, 32], strides = [1, 1]} : vector<32x32xbf16> to vector<8x32xbf16>
    %cst_19 = arith.constant dense<0.000000e+00> : vector<8x32xf32>
    %42 = tpu.matmul %40, %41, %cst_19 {dimension_numbers = #tpu.dot_dimension_numbers<[1], [0], [0], [1], [0, 0, 1, 1], [], []>} : vector<8x8xbf16>, vector<8x32xbf16>, vector<8x32xf32> -> vector<8x32xf32>
    %43 = arith.addf %18, %42 : vector<8x32xf32>
    %44 = vector.extract_strided_slice %6 {offsets = [0, 8], sizes = [8, 8], strides = [1, 1]} : vector<8x32xf32> to vector<8x8xf32>
    %45 = arith.truncf %44 : vector<8x8xf32> to vector<8x8xbf16>
    %46 = vector.extract_strided_slice %10 {offsets = [0, 8], sizes = [8, 8], strides = [1, 1]} : vector<8x64xf32> to vector<8x8xf32>
    %47 = arith.truncf %46 : vector<8x8xf32> to vector<8x8xbf16>
    %48 = vector.extract_strided_slice %10 {offsets = [0, 40], sizes = [8, 8], strides = [1, 1]} : vector<8x64xf32> to vector<8x8xf32>
    %cst_20 = arith.constant dense<0.000000e+00> : vector<8x8xf32>
    %49 = tpu.matmul %45, %47, %cst_20 {dimension_numbers = #tpu.dot_dimension_numbers<[1], [1], [0], [0], [0, 0, 1, 0], [], []>} : vector<8x8xbf16>, vector<8x8xbf16>, vector<8x8xf32> -> vector<8x8xf32>
    %cst_21 = arith.constant -3.40282347E+38 : f32
    %50 = vector.broadcast %cst_21 : f32 to vector<8x8xf32>
    %51 = arith.select %16, %50, %49 : vector<8x8xi1>, vector<8x8xf32>
    %cst_22 = arith.constant dense<0xFF800000> : vector<8xf32>
    %52 = vector.multi_reduction <maximumf>, %51, %cst_22 [1] : vector<8x8xf32> to vector<8xf32>
    %53 = vector.shape_cast %52 : vector<8xf32> to vector<8x1xf32>
    %54 = vector.broadcast %53 : vector<8x1xf32> to vector<8x8xf32>
    %55 = arith.subf %51, %54 : vector<8x8xf32>
    %56 = math.exp %55 : vector<8x8xf32>
    %cst_23 = arith.constant dense<0.000000e+00> : vector<8xf32>
    %57 = vector.multi_reduction <add>, %56, %cst_23 [1] : vector<8x8xf32> to vector<8xf32>
    %58 = vector.shape_cast %57 : vector<8xf32> to vector<8x1xf32>
    %59 = tpu.reciprocal %58 {approx = true} : vector<8x1xf32> -> vector<8x1xf32>
    %60 = vector.broadcast %59 : vector<8x1xf32> to vector<8x8xf32>
    %61 = arith.mulf %56, %60 : vector<8x8xf32>
    %62 = arith.truncf %61 : vector<8x8xf32> to vector<8x8xbf16>
    %63 = arith.truncf %48 : vector<8x8xf32> to vector<8x8xbf16>
    %cst_24 = arith.constant dense<0.000000e+00> : vector<8x8xf32>
    %64 = tpu.matmul %62, %63, %cst_24 {dimension_numbers = #tpu.dot_dimension_numbers<[1], [0], [0], [1], [0, 0, 1, 1], [], []>} : vector<8x8xbf16>, vector<8x8xbf16>, vector<8x8xf32> -> vector<8x8xf32>
    %65 = arith.truncf %64 : vector<8x8xf32> to vector<8x8xbf16>
    %66 = vector.extract_strided_slice %17 {offsets = [8, 0], sizes = [8, 32], strides = [1, 1]} : vector<32x32xbf16> to vector<8x32xbf16>
    %cst_25 = arith.constant dense<0.000000e+00> : vector<8x32xf32>
    %67 = tpu.matmul %65, %66, %cst_25 {dimension_numbers = #tpu.dot_dimension_numbers<[1], [0], [0], [1], [0, 0, 1, 1], [], []>} : vector<8x8xbf16>, vector<8x32xbf16>, vector<8x32xf32> -> vector<8x32xf32>
    %68 = arith.addf %43, %67 : vector<8x32xf32>
    %69 = vector.extract_strided_slice %6 {offsets = [0, 16], sizes = [8, 8], strides = [1, 1]} : vector<8x32xf32> to vector<8x8xf32>
    %70 = arith.truncf %69 : vector<8x8xf32> to vector<8x8xbf16>
    %71 = vector.extract_strided_slice %10 {offsets = [0, 16], sizes = [8, 8], strides = [1, 1]} : vector<8x64xf32> to vector<8x8xf32>
    %72 = arith.truncf %71 : vector<8x8xf32> to vector<8x8xbf16>
    %73 = vector.extract_strided_slice %10 {offsets = [0, 48], sizes = [8, 8], strides = [1, 1]} : vector<8x64xf32> to vector<8x8xf32>
    %cst_26 = arith.constant dense<0.000000e+00> : vector<8x8xf32>
    %74 = tpu.matmul %70, %72, %cst_26 {dimension_numbers = #tpu.dot_dimension_numbers<[1], [1], [0], [0], [0, 0, 1, 0], [], []>} : vector<8x8xbf16>, vector<8x8xbf16>, vector<8x8xf32> -> vector<8x8xf32>
    %cst_27 = arith.constant -3.40282347E+38 : f32
    %75 = vector.broadcast %cst_27 : f32 to vector<8x8xf32>
    %76 = arith.select %16, %75, %74 : vector<8x8xi1>, vector<8x8xf32>
    %cst_28 = arith.constant dense<0xFF800000> : vector<8xf32>
    %77 = vector.multi_reduction <maximumf>, %76, %cst_28 [1] : vector<8x8xf32> to vector<8xf32>
    %78 = vector.shape_cast %77 : vector<8xf32> to vector<8x1xf32>
    %79 = vector.broadcast %78 : vector<8x1xf32> to vector<8x8xf32>
    %80 = arith.subf %76, %79 : vector<8x8xf32>
    %81 = math.exp %80 : vector<8x8xf32>
    %cst_29 = arith.constant dense<0.000000e+00> : vector<8xf32>
    %82 = vector.multi_reduction <add>, %81, %cst_29 [1] : vector<8x8xf32> to vector<8xf32>
    %83 = vector.shape_cast %82 : vector<8xf32> to vector<8x1xf32>
    %84 = tpu.reciprocal %83 {approx = true} : vector<8x1xf32> -> vector<8x1xf32>
    %85 = vector.broadcast %84 : vector<8x1xf32> to vector<8x8xf32>
    %86 = arith.mulf %81, %85 : vector<8x8xf32>
    %87 = arith.truncf %86 : vector<8x8xf32> to vector<8x8xbf16>
    %88 = arith.truncf %73 : vector<8x8xf32> to vector<8x8xbf16>
    %cst_30 = arith.constant dense<0.000000e+00> : vector<8x8xf32>
    %89 = tpu.matmul %87, %88, %cst_30 {dimension_numbers = #tpu.dot_dimension_numbers<[1], [0], [0], [1], [0, 0, 1, 1], [], []>} : vector<8x8xbf16>, vector<8x8xbf16>, vector<8x8xf32> -> vector<8x8xf32>
    %90 = arith.truncf %89 : vector<8x8xf32> to vector<8x8xbf16>
    %91 = vector.extract_strided_slice %17 {offsets = [16, 0], sizes = [8, 32], strides = [1, 1]} : vector<32x32xbf16> to vector<8x32xbf16>
    %cst_31 = arith.constant dense<0.000000e+00> : vector<8x32xf32>
    %92 = tpu.matmul %90, %91, %cst_31 {dimension_numbers = #tpu.dot_dimension_numbers<[1], [0], [0], [1], [0, 0, 1, 1], [], []>} : vector<8x8xbf16>, vector<8x32xbf16>, vector<8x32xf32> -> vector<8x32xf32>
    %93 = arith.addf %68, %92 : vector<8x32xf32>
    %94 = vector.extract_strided_slice %6 {offsets = [0, 24], sizes = [8, 8], strides = [1, 1]} : vector<8x32xf32> to vector<8x8xf32>
    %95 = arith.truncf %94 : vector<8x8xf32> to vector<8x8xbf16>
    %96 = vector.extract_strided_slice %10 {offsets = [0, 24], sizes = [8, 8], strides = [1, 1]} : vector<8x64xf32> to vector<8x8xf32>
    %97 = arith.truncf %96 : vector<8x8xf32> to vector<8x8xbf16>
    %98 = vector.extract_strided_slice %10 {offsets = [0, 56], sizes = [8, 8], strides = [1, 1]} : vector<8x64xf32> to vector<8x8xf32>
    %cst_32 = arith.constant dense<0.000000e+00> : vector<8x8xf32>
    %99 = tpu.matmul %95, %97, %cst_32 {dimension_numbers = #tpu.dot_dimension_numbers<[1], [1], [0], [0], [0, 0, 1, 0], [], []>} : vector<8x8xbf16>, vector<8x8xbf16>, vector<8x8xf32> -> vector<8x8xf32>
    %cst_33 = arith.constant -3.40282347E+38 : f32
    %100 = vector.broadcast %cst_33 : f32 to vector<8x8xf32>
    %101 = arith.select %16, %100, %99 : vector<8x8xi1>, vector<8x8xf32>
    %cst_34 = arith.constant dense<0xFF800000> : vector<8xf32>
    %102 = vector.multi_reduction <maximumf>, %101, %cst_34 [1] : vector<8x8xf32> to vector<8xf32>
    %103 = vector.shape_cast %102 : vector<8xf32> to vector<8x1xf32>
    %104 = vector.broadcast %103 : vector<8x1xf32> to vector<8x8xf32>
    %105 = arith.subf %101, %104 : vector<8x8xf32>
    %106 = math.exp %105 : vector<8x8xf32>
    %cst_35 = arith.constant dense<0.000000e+00> : vector<8xf32>
    %107 = vector.multi_reduction <add>, %106, %cst_35 [1] : vector<8x8xf32> to vector<8xf32>
    %108 = vector.shape_cast %107 : vector<8xf32> to vector<8x1xf32>
    %109 = tpu.reciprocal %108 {approx = true} : vector<8x1xf32> -> vector<8x1xf32>
    %110 = vector.broadcast %109 : vector<8x1xf32> to vector<8x8xf32>
    %111 = arith.mulf %106, %110 : vector<8x8xf32>
    %112 = arith.truncf %111 : vector<8x8xf32> to vector<8x8xbf16>
    %113 = arith.truncf %98 : vector<8x8xf32> to vector<8x8xbf16>
    %cst_36 = arith.constant dense<0.000000e+00> : vector<8x8xf32>
    %114 = tpu.matmul %112, %113, %cst_36 {dimension_numbers = #tpu.dot_dimension_numbers<[1], [0], [0], [1], [0, 0, 1, 1], [], []>} : vector<8x8xbf16>, vector<8x8xbf16>, vector<8x8xf32> -> vector<8x8xf32>
    %115 = arith.truncf %114 : vector<8x8xf32> to vector<8x8xbf16>
    %116 = vector.extract_strided_slice %17 {offsets = [24, 0], sizes = [8, 32], strides = [1, 1]} : vector<32x32xbf16> to vector<8x32xbf16>
    %cst_37 = arith.constant dense<0.000000e+00> : vector<8x32xf32>
    %117 = tpu.matmul %115, %116, %cst_37 {dimension_numbers = #tpu.dot_dimension_numbers<[1], [0], [0], [1], [0, 0, 1, 1], [], []>} : vector<8x8xbf16>, vector<8x32xbf16>, vector<8x32xf32> -> vector<8x32xf32>
    %118 = arith.addf %93, %117 : vector<8x32xf32>
    %c0_38 = arith.constant 0 : index
    %c0_39 = arith.constant 0 : index
    %119 = vector.load %arg7[%c0_38, %c0_39] : memref<1x32xf32, #tpu.memory_space<vmem>>, vector<1x32xf32>
    %120 = vector.broadcast %119 : vector<1x32xf32> to vector<8x32xf32>
    %121 = arith.addf %118, %120 : vector<8x32xf32>
    %c0_40 = arith.constant 0 : index
    %c0_41 = arith.constant 0 : index
    %c0_42 = arith.constant 0 : index
    %122 = vector.load %arg8[%c0_40, %c0_41, %c0_42] : memref<1x8x32xf32, #tpu.memory_space<vmem>>, vector<1x8x32xf32>
    %123 = vector.shape_cast %122 : vector<1x8x32xf32> to vector<8x32xf32>
    %124 = vector.shape_cast %121 : vector<8x32xf32> to vector<1x8x32xf32>
    tpu.vector_store %arg8[%c0_40, %c0_41, %c0_42], %124 {strides = array<i32>} : memref<1x8x32xf32, #tpu.memory_space<vmem>>, vector<1x8x32xf32>,
    return
  }
  func.func @transform_0(%arg0: i32, %arg1: i32, %arg2: memref<1xf32, #tpu.memory_space<smem>>) -> (i32, i32, i32) {
    %c0_i32 = arith.constant 0 : i32
    %c0_i32_0 = arith.constant 0 : i32
    return %arg0, %arg1, %c0_i32 : i32, i32, i32
  }
  func.func @transform_1(%arg0: i32, %arg1: i32, %arg2: memref<1xf32, #tpu.memory_space<smem>>) -> (i32, i32) {
    %c0_i32 = arith.constant 0 : i32
    %c0_i32_0 = arith.constant 0 : i32
    %c0_i32_1 = arith.constant 0 : i32
    return %c0_i32, %c0_i32_0 : i32, i32
  }
  func.func @transform_2(%arg0: i32, %arg1: i32, %arg2: memref<1xf32, #tpu.memory_space<smem>>) -> (i32, i32) {
    %c0_i32 = arith.constant 0 : i32
    %c0_i32_0 = arith.constant 0 : i32
    %c0_i32_1 = arith.constant 0 : i32
    return %c0_i32, %c0_i32_0 : i32, i32
  }
  func.func @transform_3(%arg0: i32, %arg1: i32, %arg2: memref<1xf32, #tpu.memory_space<smem>>) -> (i32, i32) {
    %c0_i32 = arith.constant 0 : i32
    %c0_i32_0 = arith.constant 0 : i32
    %c0_i32_1 = arith.constant 0 : i32
    return %c0_i32, %c0_i32_0 : i32, i32
  }
  func.func @transform_4(%arg0: i32, %arg1: i32, %arg2: memref<1xf32, #tpu.memory_space<smem>>) -> (i32, i32) {
    %c0_i32 = arith.constant 0 : i32
    %c0_i32_0 = arith.constant 0 : i32
    %c0_i32_1 = arith.constant 0 : i32
    return %c0_i32, %c0_i32_0 : i32, i32
  }
  func.func @transform_5(%arg0: i32, %arg1: i32, %arg2: memref<1xf32, #tpu.memory_space<smem>>) -> (i32, i32, i32) {
    %c0_i32 = arith.constant 0 : i32
    %c0_i32_0 = arith.constant 0 : i32
    return %arg0, %arg1, %c0_i32 : i32, i32, i32
  }
}

</mosaic_0001>

<bundles_post_ra>
// kernel: tpu_custom_call.1
= control target key start
LH: loop header
LB: loop body
LE: loop exit
PB: predicated region body
PF: predicated region fallthrough
CT: control target
= control target key end

     0   :  { %s2149_s0 = inlined_call_operand.<no memory space> [shape: f32[1], index: 0, kind: input, shape index: {}]   ;;  %s2150_s1 = inlined_call_operand.hbm [shape: bf16[2,8,32], index: 1, kind: input, shape index: {}]   ;;  %s2151_s2 = inlined_call_operand.hbm [shape: bf16[32,32], index: 2, kind: input, shape index: {}]   ;;  %s2152_s3 = inlined_call_operand.hbm [shape: bf16[32,64], index: 3, kind: input, shape index: {}]   ;;  %s2153_s4 = inlined_call_operand.hbm [shape: bf16[32,32], index: 4, kind: input, shape index: {}]   ;;  %s2154_s5 = inlined_call_operand.vmem [shape: f32[1,32], index: 5, kind: input, shape index: {}]   ;;  %s2155_s6 = inlined_call_operand.hbm [shape: f32[2,8,32], index: 6, kind: output, shape index: {}]  }
   0x1   :  { %11 = sst [smem:[#allocation3]] %s2149_s0 }
   0x2   :  { %12 = vsyncpa [#allocation5], 0 }
   0x3   :  { %14 = vsyncpa [#allocation5 + $0x1], 0 }
   0x4   :  { %15 = vsyncpa [#allocation8], 0 }
   0x5   :  { %16 = vsyncpa [#allocation11], 0 }
   0x6   :  { %17 = vsyncpa [#allocation6], 0 }
   0x7   :  { %19 = vsyncpa [#allocation6 + $0x1], 0  ;;  %s1745_s23 = smov 0   ;;  %s1747_s24 = smov 0  }
   0x8   :  { %s1749_s25 = smov 0   ;;  %s1751_s26 = smov 0  }
   0x9   :  { %s1753_s27 = smov 0   ;;  %s1755_s28 = smov 0  }
   0xa LB: > { %2162 = sst [smem:[#allocation17_spill]] %s1669_s23  ;;  %s1205_s0 = sadd.s32 4294967295, %s1689_s28   ;;  %s1689_s28 = sphi %s1755_s28, %s25_s28   ;;  %s1685_s27 = sphi %s1753_s27, %s2185_s27   ;;  %s1681_s26 = sphi %s1751_s26, %s2184_s26   ;;  %s1677_s25 = sphi %s1749_s25, %s2183_s25   ;;  %s1673_s24 = sphi %s1747_s24, %s2182_s24   ;;  %s1669_s23 = sphi %s1745_s23, %s2181_s23  }
   0xb   : > { %s1206_s29 = sadd.s32 4294967294, %s1689_s28   ;;  %p59_p0 = scmp.ne.s32.totalorder %s1673_s24, %s1669_s23 }
   0xc   : > { %p1779_p1 = scmp.eq.s32.totalorder %s1205_s0, 0  ;;  %p1783_p2 = scmp.eq.s32.totalorder %s1205_s0, 1 }
   0xd   : > { %p175_p3 = scmp.eq.s32.totalorder %s1206_s29, 1  ;;  %p1207_p5 = scmp.ge.s32.totalorder %s1689_s28, 1 }
   0xe   : > { %s2163_s30 = scalar_select %p1779_p1, 1, 0 }
   0xf   : > { %s2164_s7 = scalar_select %p1783_p2, 1, 0 }
  0x10   : > { %p1789_p4 = por %p1779_p1, %p59_p0  ;;  %p1794_p6 = por %p175_p3, %p59_p0 }
  0x11   : > { %p182_p7 = scmp.lt.s32.totalorder %s1689_s28, 3  ;;  %s1691_s11 = smov [#allocation7]  }
  0x12   : > { %s2165_s8 = scalar_select %p1789_p4, 1, 0 }
  0x13   : > { %s2166_s9 = scalar_select %p1794_p6, 1, 0 }
  0x14   : > { %p1799_p8 = pnand %p1207_p5, %p182_p7  ;;  %s194_s12 = sshll.u32 %s1691_s11, 4  ;;  %s1803_s12 = int_to_ptr.vmem [resolvable:$true] %s194_s12 }
  0x15   : > { %2167 = sst [smem:[#allocation18_spill]] %s2166_s9  ;;  %s1692_s14 = smov [#allocation9]  }
  0x16   : > { %s2168_s10 = scalar_select %p1799_p8, 1, 0 }
  0x17   : > { %p1377_p9 = pneg %p1799_p8  ;;  %s207_s15 = sshll.u32 %s1692_s14, 4  ;;  %s1814_s15 = int_to_ptr.vmem [resolvable:$true] %s207_s15 }
  0x18   : > { %s1693_s16 = smov [#allocation10]   ;;  %s1485_s20 = scalar_lea.hbm %s2151_s2, 256 }
  0x19   : > { %p1810_p11 = pnand %p1377_p9, %p1779_p1  ;;  %s1816_s17 = sshll.u32 %s1693_s16, 4  ;;  %s221_s17 = int_to_ptr.vmem [resolvable:$true] %s1816_s17 }
  0x1a   : > { %p1486_p12 = scmp.ne.s32.totalorder %s2151_s2, %s1485_s20  ;;  %p1492_p5 = scmp.lt.u32.totalorder %s1485_s20, %s2151_s2 }
  0x1b   : > { %p1826_p13 = pneg %p1810_p11 }
  0x1d   : > { %p1488_p0 = pnand %p1826_p13, %p1486_p12 }
  0x1f   : > { %p1489_p3 = pneg %p1488_p0 }
  0x21   : > { %p1494_p7 = pnand %p1492_p5, %p1489_p3 }
  0x23   : > { %1497 = shalt.err (!%p1494_p7)
}
  0x24   : > { %s1498_s14 = scalar_lea.vmem %s1803_s12, 256  ;;  %p1506_p1 = scmp.lt.s32.totalorder %s1803_s12, %s1803_s12 }
  0x25   : > { %p1499_p9 = scmp.ne.s32.totalorder %s1803_s12, %s1498_s14  ;;  %p1507_p4 = scmp.lt.s32.totalorder %s1498_s14, %s1498_s14 }
  0x27   : > { %p1501_p10 = pnand %p1499_p9, %p1826_p13  ;;  %p1508_p12 = por %p1507_p4, %p1506_p1 }
  0x29   : > { %p1502_p6 = pneg %p1501_p10 }
  0x2b   : > { %p1509_p0 = pnand %p1508_p12, %p1502_p6 }
  0x2d   : > { %1512 = shalt.err (!%p1509_p0)
}
  0x2e   : > { %s1694_s16 = smov 64   ;;  %s1695_s18 = smov 4  }
  0x2f   : > { %1380 = dma.hbm_to_vmem [thread:$0]  (!%p1810_p11), %s2151_s2, 256, %s1803_s12, [#allocation8], %s1694_s16, %s1694_s16, %s1695_s18  }
  0x30   : > { %s1513_s29 = scalar_lea.hbm %s2152_s3, 256 }
  0x31   : > { %p1514_p1 = scmp.ne.s32.totalorder %s2152_s3, %s1513_s29  ;;  %p1520_p10 = scmp.lt.u32.totalorder %s1513_s29, %s2152_s3 }
  0x33   : > { %p1516_p4 = pnand %p1514_p1, %p1826_p13 }
  0x35   : > { %p1517_p6 = pneg %p1516_p4 }
  0x37   : > { %p1522_p3 = pnand %p1520_p10, %p1517_p6 }
  0x39   : > { %1525 = shalt.err (!%p1522_p3)
}
  0x3a   : > { %s1526_s12 = scalar_lea.vmem %s1814_s15, 256  ;;  %p1534_p12 = scmp.lt.s32.totalorder %s1814_s15, %s1814_s15 }
  0x3b   : > { %p1527_p5 = scmp.ne.s32.totalorder %s1814_s15, %s1526_s12  ;;  %p1535_p0 = scmp.lt.s32.totalorder %s1526_s12, %s1526_s12 }
  0x3d   : > { %p1529_p7 = pnand %p1527_p5, %p1826_p13  ;;  %p1536_p1 = por %p1535_p0, %p1534_p12 }
  0x3f   : > { %p1530_p9 = pneg %p1529_p7 }
  0x41   : > { %p1537_p4 = pnand %p1536_p1, %p1530_p9 }
  0x43   : > { %1540 = shalt.err (!%p1537_p4)
}
  0x44   : > { %1383 = dma.hbm_to_vmem [thread:$0]  (!%p1810_p11), %s2152_s3, 256, %s1814_s15, [#allocation8], %s1694_s16, %s1694_s16, %s1695_s18  }
  0x45   : > { %s1541_s21 = scalar_lea.hbm %s2153_s4, 256 }
  0x46   : > { %p1542_p6 = scmp.ne.s32.totalorder %s2153_s4, %s1541_s21  ;;  %p1548_p5 = scmp.lt.u32.totalorder %s1541_s21, %s2153_s4 }
  0x48   : > { %p1544_p10 = pnand %p1542_p6, %p1826_p13 }
  0x4a   : > { %p1545_p3 = pneg %p1544_p10 }
  0x4c   : > { %p1550_p7 = pnand %p1548_p5, %p1545_p3 }
  0x4e   : > { %1553 = shalt.err (!%p1550_p7)
}
  0x4f   : > { %s1554_s12 = scalar_lea.vmem %s221_s17, 256  ;;  %p1562_p1 = scmp.lt.s32.totalorder %s221_s17, %s221_s17 }
  0x50   : > { %p1555_p9 = scmp.ne.s32.totalorder %s221_s17, %s1554_s12  ;;  %p1563_p4 = scmp.lt.s32.totalorder %s1554_s12, %s1554_s12 }
  0x52   : > { %p1557_p12 = pnand %p1555_p9, %p1826_p13  ;;  %p1564_p8 = por %p1563_p4, %p1562_p1 }
  0x54   : > { %p1558_p0 = pneg %p1557_p12 }
  0x56   : > { %p1565_p2 = pnand %p1564_p8, %p1558_p0 }
  0x58   : > { %1568 = shalt.err (!%p1565_p2)
}
  0x59   : > { %1386 = dma.hbm_to_vmem [thread:$0]  (!%p1810_p11), %s2153_s4, 256, %s221_s17, [#allocation11], %s1694_s16, %s1694_s16, %s1695_s18  }
  0x5a   : > { %s46_s0 = sadd.s32 1, %s1677_s25  ;;  %s37_s13 = sadd.s32 1, %s1685_s27 }
  0x5b   : > { %p53_p2 = scmp.ne.s32.totalorder %s1677_s25, %s1673_s24  ;;  %p39_p8 = scmp.ge.s32.totalorder %s37_s13, 2 }
  0x5c   : > { %p54_p13 = scmp.eq.s32.totalorder %s1689_s28, 0  ;;  %p2171_p6 = scmp.ne.s32.totalorder %s2164_s7, 0 }
  0x5d   : > { %p1398_p3 = scmp.lt.s32.totalorder %s1689_s28, 2  ;;  %s2187_s13 = smov (%p39_p8, %s37_s13), 0 }
  0x5e   : > { %p1905_p10 = por %p2171_p6, %p53_p2  ;;  %p55_p5 = por %p54_p13, %p53_p2 }
  0x5f   : > { %s237_s19 = sand.u32 1, %s1677_s25   ;;  %s41_s20 = ssub.s32 %s1685_s27, %s2187_s13 }
  0x60   : > { %p44_p7 = scmp.eq.s32.totalorder %s41_s20, 0  ;;  %s1212_s17 = sshll.u32 %s237_s19, 2 }
  0x61   : > { %s1213_s16 = sshll.u32 %s1685_s27, 6  ;;  %s241_s29 = scalar_lea.vmem [#allocation4], %s1212_s17 }
  0x62   : > { %s1917_s18 = scalar_select %p44_p7, %s1677_s25, %s46_s0  }
  0x63   : > { %s1922_s7 = scalar_lea.hbm %s2150_s1, %s1213_s16  ;;  %s249_s11 = sshll.u32 %s241_s29, 4  ;;  %s1924_s11 = int_to_ptr.vmem [resolvable:$true] %s249_s11 }
  0x64   : > { %p1928_p11 = pnand %p1398_p3, %p55_p5  ;;  %s238_s12 = scalar_lea.sflag [#allocation5], %s237_s19 }
  0x65   : > { %s1569_s15 = scalar_lea.hbm %s1922_s7, 64  ;;  %s1574_s20 = scalar_lea.hbm %s2150_s1, 128 }
  0x66   : > { %p1570_p9 = scmp.ne.s32.totalorder %s1922_s7, %s1569_s15  ;;  %p1571_p12 = pneg %p1928_p11 }
  0x67   : > { %p1575_p4 = scmp.lt.u32.totalorder %s1922_s7, %s2150_s1  ;;  %p1576_p2 = scmp.lt.u32.totalorder %s1574_s20, %s1569_s15 }
  0x68   : > { %p1572_p0 = pnand %p1571_p12, %p1570_p9  ;;  %p1578_p13 = scmp.lt.u32.totalorder %s1569_s15, %s1922_s7 }
  0x69   : > { %p1577_p8 = por %p1576_p2, %p1575_p4 }
  0x6a   : > { %p1573_p1 = pneg %p1572_p0 }
  0x6b   : > { %p1579_p6 = por %p1578_p13, %p1577_p8 }
  0x6d   : > { %p1580_p3 = pnand %p1579_p6, %p1573_p1 }
  0x6f   : > { %1583 = shalt.err (!%p1580_p3)
}
  0x70   : > { %s1584_s19 = scalar_lea.vmem %s1924_s11, 64  ;;  %s1696_s21 = smov [#allocation4]  }
  0x71   : > { %p1585_p5 = scmp.ne.s32.totalorder %s1924_s11, %s1584_s19  ;;  %s1589_s22 = sshll.u32 %s1696_s21, 4  ;;  %s1590_s22 = int_to_ptr.vmem [resolvable:$false] %s1589_s22 }
  0x72   : > { %s1591_s29 = scalar_lea.vmem %s1590_s22, 128  ;;  %p1592_p0 = scmp.lt.s32.totalorder %s1924_s11, %s1590_s22 }
  0x73   : > { %p1587_p7 = pnand %p1585_p5, %p1571_p12  ;;  %p1593_p4 = scmp.lt.s32.totalorder %s1591_s29, %s1584_s19 }
  0x75   : > { %p1588_p9 = pneg %p1587_p7  ;;  %p1594_p2 = por %p1593_p4, %p1592_p0 }
  0x77   : > { %p1595_p8 = pnand %p1594_p2, %p1588_p9 }
  0x79   : > { %1598 = shalt.err (!%p1595_p8)
}
  0x7a   : > { %1390 = dma.hbm_to_vmem [thread:$0]  (!%p1928_p11), %s1922_s7, 64, %s1924_s11, %s238_s12  }
  0x7b   : > { %p2174_p1 = scmp.ne.s32.totalorder %s2168_s10, 0 }
  0x7c   : > { %s1960_s15 = sand.u32 (!%p2174_p1), 1, %s1673_s24   ;;  %p2175_p12 = scmp.ne.s32.totalorder (!%p2174_p1), %s2165_s8, 0 }
  0x7d   : > { %258 = sbr.rel (%p2174_p1) target bundleno = 2746 (0xaba), region = 40  ;;  %s1215_s23 = sshll.u32 (!%p2174_p1), %s1960_s15, 2 }
  0x7e   : > { %s261_s0 = scalar_lea.sflag (!%p2174_p1), [#allocation5], %s1960_s15  ;;  %s264_s20 = scalar_lea.vmem (!%p2174_p1), [#allocation4], %s1215_s23 }
  0x84   : > { %1652 = dma.done.wait (%p2175_p12), %s261_s0, 64  }
  0x85   : > { %1654 = vsyncadd (%p2175_p12), %s261_s0, 4294967232  ;;  %p2176_p13 = scmp.ne.s32.totalorder %s2163_s30, 0 }
  0x87   : > { %1656 = dma.done.wait (%p2176_p13), [#allocation8], 512  }
  0x88   : > { %1658 = vsyncadd (%p2176_p13), [#allocation8], 4294966784 }
  0x89   : > { %1660 = dma.done.wait (%p2176_p13), [#allocation11], 256  }
  0x8a   : > { %1662 = vsyncadd (%p2176_p13), [#allocation11], 4294967040  ;;  %v1697_v0 = vmov 0.0   ;;  %vm1698_vm0 = vmmov 0   ;;  %v1465_v1 = vld [vmem:[#allocation9] sm:$0xff]   ;;  %v1466_v2 = vld [vmem:[#allocation7] sm:$0xff]   ;;  %v425_v22 = vlaneseq }
  0x8b   : > { %1281 = vmatprep.subr.bf16.mxu1 %v1697_v0  ;;  %1273 = vmatprep.subr.bf16.mxu0 %v1697_v0  ;;  %v1467_v3 = vld [vmem:[#allocation9 + $0x8] sm:$0xff]   ;;  %v1468_v4 = vld [vmem:[#allocation7 + $0x8] sm:$0xff]   ;;  %vm321_vm1 = vcmask 261120   ;;  %s365_s30 = sld [smem:[#allocation3]]  ;;  %vm438_vm2 = vcmask 64512   ;;  %s1699_s8 = smov 120  }
  0x8c   : > { %1285 = vmatprep.mubr.msk.bf16.mxu1 %vm1698_vm0, %v1697_v0  ;;  %1277 = vmatprep.mubr.msk.bf16.mxu0 %vm1698_vm0, %v1697_v0  ;;  %v304_v5 = vld [vmem:[%s264_s20] sm:$0xf]  ;;  %v2010_v23 = vshrl.u32 %v425_v22, 7  ;;  %v2012_v24 = vand.u32 127, %v425_v22  ;;  %s1700_s10 = smov 96   ;;  %vm504_vm4 = vcmask 1043456  }
  0x8d   : > { %1282 = vmatpush3.bf16.msra.mxu1 %v1465_v1  ;;  %1274 = vmatpush3.bf16.msra.mxu0 %v1466_v2  ;;  %s1701_s7 = smov 88   ;;  %s1702_s11 = smov 112   ;;  %v433_v53 = vld [vmem:[#allocation10 + $0x4] sm:$0xf]  ;;  %v432_v59 = vld [vmem:[#allocation10] sm:$0xf] }
  0x8e   : > { %1283 = vmatprep.subr.bf16.mxu1 %v1697_v0  ;;  %1275 = vmatprep.subr.bf16.mxu0 %v1697_v0  ;;  %vm431_vm3 = vcmp.eq.s32.totalorder %v2010_v23, %v2012_v24  ;;  %v666_v54 = vsel %vm504_vm4, %v433_v53, 0  ;;  %v712_v62 = vsel %vm504_vm4, %v432_v59, 0  ;;  %s1703_s14 = smov 80   ;;  %s1704_s12 = smov 104  }
  0x8f   : > { %s1705_s17 = smov 72   ;;  %s1219_s16 = sshll.u32 %s1960_s15, 3 }
  0x90   : > { %s1240_s22 = sshll.u32 %s1681_s26, 7  ;;  %s302_s29 = scalar_lea.vmem [#allocation12], %s1219_s16 }
  0x91   : > { %1284 = vmatpush3.bf16.msra.mxu1 %v1467_v3  ;;  %1276 = vmatpush3.bf16.msra.mxu0 %v1468_v4  ;;  %v366_v6 = vstv %s365_s30  ;;  %s1096_s23 = sshll.u32 %s302_s29, 4  ;;  %s2099_s30 = scalar_lea.hbm %s2155_s6, %s1240_s22  ;;  %s2101_s23 = int_to_ptr.vmem [resolvable:$true] %s1096_s23 }
  0x92   : > { %1295 = vmatprep.subr.bf16.mxu1 %v1697_v0  ;;  %1289 = vmatprep.subr.bf16.mxu0 %v1697_v0  ;;  %s1082_s26 = scalar_lea.sflag [#allocation6], %s1960_s15 }
  0x94   : > { %1286 = vmatmul.mubr.msk.bf16.vlgmr.msra.gmra.mrb[0].mxu1 %vm321_vm1, %v304_v5  ;;  %1278 = vmatmul.mubr.msk.bf16.vlgmr.msra.gmra.mrb[0].mxu0 %vm321_vm1, %v304_v5 }
  0x95   : > { %1297 = vmatprep.mubr.msk.bf16.mxu1 %vm1698_vm0, %v1697_v0  ;;  %1291 = vmatprep.mubr.msk.bf16.mxu0 %vm1698_vm0, %v1697_v0 }
 0x167   : > { %v418_v7 = vpop.f32.mrb[0].mxu1  ;;  %v359_v10 = vpop.f32.mrb[0].mxu0 }
 0x168   : > { %v1992_v8 = vpack.c.bf16 %v418_v7, %v418_v7  ;;  %v1287_v9 = vpop.f32.mrb[1].mxu1  ;;  %v367_v12 = vmul.f32 %v366_v6, %v359_v10  ;;  %v1279_v13 = vpop.f32.mrb[1].mxu0 }
 0x169   : > { %v421_v11 = vpop.f32.mrb[2].mxu1  ;;  %v362_v16 = vpop.f32.mrb[2].mxu0 }
 0x16a   : > { %552 = vrot.lane.b32.xlu0 %v1992_v8, %s1699_s8  ;;  %v1288_v14 = vpop.f32.mrb[3].mxu1  ;;  %v443_v15 = vsel %vm438_vm2, %v1992_v8, 0  ;;  %v1997_v17 = vpack.c.bf16 %v367_v12, %v367_v12  ;;  %v1280_v18 = vpop.f32.mrb[3].mxu0 }
 0x16b   : > { %1290 = vmatpush3.bf16.xpose.msra.mxu0 %v443_v15 }
 0x16c   : > { %1301 = vmatprep.subr.bf16.mxu0 %v1697_v0 }
 0x16e   : > { %550 = vrot.lane.b32.xlu0 %v1997_v17, %s1699_s8  ;;  %s1599_s8 = scalar_lea.vmem %s2101_s23, 128 }
 0x16f   : > { %p1600_p11 = scmp.ne.s32.totalorder %s2101_s23, %s1599_s8 }
 0x171   : > { %p1601_p6 = pnand %p1600_p11, %p1905_p10 }
 0x172   : > { %1292 = vmatmul.mubr.msk.bf16.vlgmr.msra.gmra.mrb[4].mxu0 %vm438_vm2, %v1997_v17 }
 0x173   : > { %1303 = vmatprep.mubr.msk.bf16.mxu0 %vm1698_vm0, %v1697_v0  ;;  %p1602_p3 = pneg %p1601_p6 }
 0x1dc   : > { %v553_v19 = vpop.permute.xlu0 %552 }
 0x1dd   : > { %v558_v20 = vsel %vm438_vm2, %v553_v19, 0 }
 0x1de   : > { %1302 = vmatpush3.bf16.xpose.msra.mxu0 %v558_v20 }
 0x1df   : > { %1313 = vmatprep.subr.bf16.mxu0 %v1697_v0 }
 0x1e0   : > { %v551_v21 = vpop.permute.xlu0 %550 }
 0x1e5   : > { %1304 = vmatmul.mubr.msk.bf16.vlgmr.msra.gmra.mrb[8].mxu0 %vm438_vm2, %v551_v21 }
 0x1e6   : > { %1315 = vmatprep.mubr.msk.bf16.mxu0 %vm1698_vm0, %v1697_v0  ;;  %1314 = vmatpush3.bf16.msra.mxu0 %v666_v54 }
 0x1e7   : > { %1325 = vmatprep.subr.bf16.mxu0 %v1697_v0 }
 0x245   : > { %v479_v25 = vpop.f32.mrb[4].mxu0 }
 0x246   : > { %v485_v26 = vsel %vm431_vm3, -3.4028235e+38, %v479_v25  ;;  %v1293_v27 = vpop.f32.mrb[5].mxu0 }
 0x247   : > { %v482_v28 = vpop.f32.mrb[6].mxu0  ;;  %v486_v29 = vsel %vm438_vm2, %v485_v26, -inf }
 0x248   : > { %487 = vmax.xlane.f32.xlu1 %v486_v29  ;;  %v1294_v30 = vpop.f32.mrb[7].mxu0 }
 0x2b8   : > { %v594_v31 = vpop.f32.mrb[8].mxu0 }
 0x2b9   : > { %v600_v32 = vsel %vm431_vm3, -3.4028235e+38, %v594_v31  ;;  %v1305_v33 = vpop.f32.mrb[9].mxu0 }
 0x2ba   : > { %v597_v34 = vpop.f32.mrb[10].mxu0  ;;  %v601_v35 = vsel %vm438_vm2, %v600_v32, -inf }
 0x2bb   : > { %602 = vmax.xlane.f32.xlu1 %v601_v35  ;;  %v1306_v36 = vpop.f32.mrb[11].mxu0 }
 0x2cc   : > { %499 = vrot.lane.b32.xlu1 %v1992_v8, %s1700_s10  ;;  %s1706_s10 = smov [#allocation12]  }
 0x2d5   : > { %v488_v37 = vpop.xlane.xlu1 %487 }
 0x2d6   : > { %v489_v38 = vsub.f32 %v485_v26, %v488_v37 }
 0x2d8   : > { %v490_v39 = vmul.f32 1.442695, %v489_v38 }
 0x2da   : > { %1469 = vpow2.f32 %v490_v39 }
 0x2e4   : > { %v1470_v40 = vpop.eup %1469 }
 0x2e5   : > { %v492_v41 = vsel %vm438_vm2, %v1470_v40, 0.0 }
 0x2e6   : > { %493 = vadd.xlane.f32.xlu0 %v492_v41 }
 0x348   : > { %v603_v42 = vpop.xlane.xlu1 %602 }
 0x349   : > { %v604_v43 = vsub.f32 %v600_v32, %v603_v42 }
 0x34b   : > { %v605_v44 = vmul.f32 1.442695, %v604_v43 }
 0x34c   : > { %v500_v45 = vpop.permute.xlu1 %499 }
 0x34d   : > { %1471 = vpow2.f32 %v605_v44  ;;  %v506_v46 = vsel %vm504_vm4, %v500_v45, 0  ;;  %v434_v45 = vld [vmem:[#allocation10 + $0x8] sm:$0xf] }
 0x34e   : > { %1296 = vmatpush3.bf16.msra.mxu1 %v506_v46  ;;  %v870_v46 = vsel %vm504_vm4, %v434_v45, 0 }
 0x34f   : > { %1307 = vmatprep.subr.bf16.mxu1 %v1697_v0 }
 0x357   : > { %v1472_v47 = vpop.eup %1471 }
 0x358   : > { %v607_v48 = vsel %vm438_vm2, %v1472_v47, 0.0 }
 0x359   : > { %608 = vadd.xlane.f32.xlu1 %v607_v48 }
 0x36a   : > { %613 = vrot.lane.b32.xlu1 %v1992_v8, %s1701_s7  ;;  %s1603_s7 = sshll.u32 %s1706_s10, 4  ;;  %s1604_s7 = int_to_ptr.vmem [resolvable:$false] %s1603_s7 }
 0x36b   : > { %p1606_p5 = scmp.lt.s32.totalorder %s2101_s23, %s1604_s7 }
 0x36e   : > { %756 = vrot.lane.b32.xlu1 %v1992_v8, %s1702_s11 }
 0x372   : > { %754 = vrot.lane.b32.xlu1 %v1997_v17, %s1702_s11  ;;  %s1605_s11 = scalar_lea.vmem %s1604_s7, 256 }
 0x373   : > { %v494_v49 = vpop.xlane.xlu0 %493  ;;  %p1607_p7 = scmp.lt.s32.totalorder %s1605_s11, %s1599_s8 }
 0x374   : > { %1473 = vrcp.f32 %v494_v49 }
 0x375   : > { %p1608_p9 = por %p1607_p7, %p1606_p5 }
 0x377   : > { %p1609_p0 = pnand %p1608_p9, %p1602_p3 }
 0x37e   : > { %v1474_v50 = vpop.eup %1473 }
 0x37f   : > { %v496_v51 = vmul.f32 %v1474_v50, %v1470_v40 }
 0x381   : > { %v497_v52 = vpack.c.bf16 %v496_v51, %v496_v51 }
 0x383   : > { %1298 = vmatmul.mubr.msk.bf16.vlgmr.msra.gmra.mrb[4].mxu1 %vm438_vm2, %v497_v52 }
 0x384   : > { %1309 = vmatprep.mubr.msk.bf16.mxu1 %vm1698_vm0, %v1697_v0 }
 0x3e6   : > { %v609_v55 = vpop.xlane.xlu1 %608 }
 0x3e7   : > { %1475 = vrcp.f32 %v609_v55 }
 0x3ea   : > { %v614_v56 = vpop.permute.xlu1 %613 }
 0x3eb   : > { %v619_v57 = vsel %vm504_vm4, %v614_v56, 0 }
 0x3ec   : > { %1308 = vmatpush3.bf16.msra.mxu1 %v619_v57 }
 0x3ed   : > { %1319 = vmatprep.subr.bf16.mxu1 %v1697_v0 }
 0x3ee   : > { %v757_v5 = vpop.permute.xlu1 %756 }
 0x3ef   : > { %v762_v11 = vsel %vm438_vm2, %v757_v5, 0 }
 0x3f1   : > { %v1476_v58 = vpop.eup %1475 }
 0x3f2   : > { %v611_v60 = vmul.f32 %v1476_v58, %v1472_v47  ;;  %v755_v13 = vpop.permute.xlu1 %754 }
 0x3f4   : > { %v612_v61 = vpack.c.bf16 %v611_v60, %v611_v60 }
 0x3f6   : > { %1310 = vmatmul.mubr.msk.bf16.vlgmr.msra.gmra.mrb[8].mxu1 %vm438_vm2, %v612_v61 }
 0x3f7   : > { %1320 = vmatpush3.bf16.msra.mxu1 %v712_v62  ;;  %1321 = vmatprep.mubr.msk.bf16.mxu1 %vm1698_vm0, %v1697_v0 }
 0x3f8   : > { %1331 = vmatprep.subr.bf16.mxu1 %v1697_v0 }
 0x456   : > { %v542_v63 = vpop.f32.mrb[4].mxu1 }
 0x457   : > { %v548_v1 = vpack.c.bf16 %v542_v63, %v542_v63  ;;  %v1299_v2 = vpop.f32.mrb[5].mxu1 }
 0x458   : > { %v545_v3 = vpop.f32.mrb[6].mxu1 }
 0x459   : > { %v1300_v4 = vpop.f32.mrb[7].mxu1  ;;  %1322 = vmatmul.mubr.msk.bf16.vlgmr.msra.gmra.mrb[12].mxu1 %vm438_vm2, %v548_v1 }
 0x45a   : > { %1333 = vmatprep.mubr.msk.bf16.mxu1 %vm1698_vm0, %v1697_v0 }
 0x4c9   : > { %v655_v6 = vpop.f32.mrb[8].mxu1 }
 0x4ca   : > { %v661_v7 = vpack.c.bf16 %v655_v6, %v655_v6  ;;  %v1311_v9 = vpop.f32.mrb[9].mxu1 }
 0x4cb   : > { %v658_v10 = vpop.f32.mrb[10].mxu1 }
 0x4cc   : > { %v1312_v12 = vpop.f32.mrb[11].mxu1  ;;  %1316 = vmatmul.mubr.msk.bf16.vlgmr.msra.gmra.mrb[12].mxu0 %vm438_vm2, %v661_v7 }
 0x4cd   : > { %1326 = vmatpush3.bf16.xpose.msra.mxu0 %v762_v11  ;;  %1327 = vmatprep.mubr.msk.bf16.mxu0 %vm1698_vm0, %v1697_v0 }
 0x4ce   : > { %1337 = vmatprep.subr.bf16.mxu0 %v1697_v0 }
 0x4d4   : > { %1328 = vmatmul.mubr.msk.bf16.vlgmr.msra.gmra.mrb[16].mxu0 %vm438_vm2, %v755_v13 }
 0x4d5   : > { %1339 = vmatprep.mubr.msk.bf16.mxu0 %vm1698_vm0, %v1697_v0  ;;  %1338 = vmatpush3.bf16.msra.mxu0 %v870_v46 }
 0x4d6   : > { %1349 = vmatprep.subr.bf16.mxu0 %v1697_v0 }
 0x52c   : > { %v748_v14 = vpop.f32.mrb[12].mxu1 }
 0x52d   : > { %v1323_v15 = vpop.f32.mrb[13].mxu1 }
 0x52e   : > { %v751_v16 = vpop.f32.mrb[14].mxu1 }
 0x52f   : > { %v1324_v18 = vpop.f32.mrb[15].mxu1  ;;  %v1238_v16 = vld [vmem:[%s2154_s5] ss:$0 sm:$0xff] }
 0x59f   : > { %v702_v19 = vpop.f32.mrb[12].mxu0 }
 0x5a0   : > { %v2055_v20 = vadd.f32 %v748_v14, %v702_v19  ;;  %v1317_v21 = vpop.f32.mrb[13].mxu0 }
 0x5a1   : > { %v705_v22 = vpop.f32.mrb[14].mxu0 }
 0x5a2   : > { %v1318_v25 = vpop.f32.mrb[15].mxu0 }
 0x5a7   : > { %v798_v26 = vpop.f32.mrb[16].mxu0 }
 0x5a8   : > { %v804_v27 = vsel %vm431_vm3, -3.4028235e+38, %v798_v26  ;;  %v1329_v28 = vpop.f32.mrb[17].mxu0 }
 0x5a9   : > { %v801_v29 = vpop.f32.mrb[18].mxu0  ;;  %v805_v30 = vsel %vm438_vm2, %v804_v27, -inf }
 0x5aa   : > { %806 = vmax.xlane.f32.xlu0 %v805_v30  ;;  %v1330_v31 = vpop.f32.mrb[19].mxu0 }
 0x5c0   : > { %817 = vrot.lane.b32.xlu0 %v1992_v8, %s1703_s14 }
 0x5c4   : > { %915 = vrot.lane.b32.xlu0 %v1992_v8, %s1704_s12 }
 0x5c8   : > { %913 = vrot.lane.b32.xlu0 %v1997_v17, %s1704_s12 }
 0x637   : > { %v807_v32 = vpop.xlane.xlu0 %806 }
 0x638   : > { %v808_v33 = vsub.f32 %v804_v27, %v807_v32 }
 0x63a   : > { %v809_v34 = vmul.f32 1.442695, %v808_v33 }
 0x63b   : > { %v818_v35 = vpop.permute.xlu0 %817 }
 0x63c   : > { %1477 = vpow2.f32 %v809_v34  ;;  %v823_v36 = vsel %vm504_vm4, %v818_v35, 0 }
 0x63d   : > { %1332 = vmatpush3.bf16.msra.mxu1 %v823_v36 }
 0x63e   : > { %1343 = vmatprep.subr.bf16.mxu1 %v1697_v0 }
 0x63f   : > { %v916_v42 = vpop.permute.xlu0 %915 }
 0x640   : > { %v921_v43 = vsel %vm438_vm2, %v916_v42, 0 }
 0x643   : > { %v914_v44 = vpop.permute.xlu0 %913 }
 0x646   : > { %v1478_v37 = vpop.eup %1477 }
 0x647   : > { %v811_v38 = vsel %vm438_vm2, %v1478_v37, 0.0 }
 0x648   : > { %812 = vadd.xlane.f32.xlu1 %v811_v38 }
 0x6d5   : > { %v813_v39 = vpop.xlane.xlu1 %812 }
 0x6d6   : > { %1479 = vrcp.f32 %v813_v39 }
 0x6e0   : > { %v1480_v40 = vpop.eup %1479 }
 0x6e1   : > { %v815_v41 = vmul.f32 %v1480_v40, %v1478_v37 }
 0x6e3   : > { %v816_v17 = vpack.c.bf16 %v815_v41, %v815_v41 }
 0x6e5   : > { %1334 = vmatmul.mubr.msk.bf16.vlgmr.msra.gmra.mrb[16].mxu1 %vm438_vm2, %v816_v17 }
 0x6e6   : > { %1344 = vmatpush3.bf16.xpose.msra.mxu1 %v921_v43  ;;  %1345 = vmatprep.mubr.msk.bf16.mxu1 %vm1698_vm0, %v1697_v0 }
 0x6e7   : > { %1355 = vmatprep.subr.bf16.mxu1 %v1697_v0 }
 0x6ed   : > { %1346 = vmatmul.mubr.msk.bf16.vlgmr.msra.gmra.mrb[20].mxu1 %vm438_vm2, %v914_v44 }
 0x6ee   : > { %1357 = vmatprep.mubr.msk.bf16.mxu1 %vm1698_vm0, %v1697_v0 }
 0x7b8   : > { %v859_v47 = vpop.f32.mrb[16].mxu1 }
 0x7b9   : > { %v865_v48 = vpack.c.bf16 %v859_v47, %v859_v47  ;;  %v1335_v49 = vpop.f32.mrb[17].mxu1 }
 0x7ba   : > { %v862_v50 = vpop.f32.mrb[18].mxu1 }
 0x7bb   : > { %v1336_v51 = vpop.f32.mrb[19].mxu1  ;;  %1340 = vmatmul.mubr.msk.bf16.vlgmr.msra.gmra.mrb[20].mxu0 %vm438_vm2, %v865_v48 }
 0x7bc   : > { %1351 = vmatprep.mubr.msk.bf16.mxu0 %vm1698_vm0, %v1697_v0  ;;  %v435_v0 = vld [vmem:[#allocation10 + $0xc] sm:$0xf] }
 0x7bd   : > { %v1029_v23 = vsel %vm504_vm4, %v435_v0, 0 }
 0x7be   : > { %1356 = vmatpush3.bf16.msra.mxu1 %v1029_v23 }
 0x7c0   : > { %v957_v52 = vpop.f32.mrb[20].mxu1 }
 0x7c1   : > { %v963_v53 = vsel %vm431_vm3, -3.4028235e+38, %v957_v52  ;;  %v1347_v54 = vpop.f32.mrb[21].mxu1 }
 0x7c2   : > { %v960_v55 = vpop.f32.mrb[22].mxu1  ;;  %v964_v56 = vsel %vm438_vm2, %v963_v53, -inf }
 0x7c3   : > { %965 = vmax.xlane.f32.xlu0 %v964_v56  ;;  %v1348_v57 = vpop.f32.mrb[23].mxu1 }
 0x850   : > { %v966_v58 = vpop.xlane.xlu0 %965 }
 0x851   : > { %v967_v59 = vsub.f32 %v963_v53, %v966_v58 }
 0x853   : > { %v968_v60 = vmul.f32 1.442695, %v967_v59 }
 0x855   : > { %1481 = vpow2.f32 %v968_v60 }
 0x85f   : > { %v1482_v61 = vpop.eup %1481 }
 0x860   : > { %v970_v62 = vsel %vm438_vm2, %v1482_v61, 0.0 }
 0x861   : > { %971 = vadd.xlane.f32.xlu1 %v970_v62 }
 0x872   : > { %976 = vrot.lane.b32.xlu1 %v1992_v8, %s1705_s17 }
 0x88e   : > { %v906_v24 = vpop.f32.mrb[20].mxu0 }
 0x88f   : > { %v912_v63 = vadd.f32 %v906_v24, %v2055_v20  ;;  %v1341_v1 = vpop.f32.mrb[21].mxu0 }
 0x890   : > { %v909_v2 = vpop.f32.mrb[22].mxu0 }
 0x891   : > { %v1342_v3 = vpop.f32.mrb[23].mxu0 }
 0x8ee   : > { %v972_v4 = vpop.xlane.xlu1 %971 }
 0x8ef   : > { %1483 = vrcp.f32 %v972_v4 }
 0x8f2   : > { %v977_v5 = vpop.permute.xlu1 %976 }
 0x8f3   : > { %v982_v6 = vsel %vm504_vm4, %v977_v5, 0 }
 0x8f4   : > { %1350 = vmatpush3.bf16.msra.mxu0 %v982_v6 }
 0x8f9   : > { %v1484_v7 = vpop.eup %1483 }
 0x8fa   : > { %v974_v8 = vmul.f32 %v1484_v7, %v1482_v61 }
 0x8fc   : > { %v975_v9 = vpack.c.bf16 %v974_v8, %v974_v8 }
 0x8fe   : > { %1352 = vmatmul.mubr.msk.bf16.vlgmr.msra.gmra.mrb[24].mxu0 %vm438_vm2, %v975_v9 }
 0x9d1   : > { %v1018_v10 = vpop.f32.mrb[24].mxu0 }
 0x9d2   : > { %v1024_v11 = vpack.c.bf16 %v1018_v10, %v1018_v10  ;;  %v1353_v12 = vpop.f32.mrb[25].mxu0 }
 0x9d3   : > { %v1021_v13 = vpop.f32.mrb[26].mxu0 }
 0x9d4   : > { %v1354_v14 = vpop.f32.mrb[27].mxu0  ;;  %1358 = vmatmul.mubr.msk.bf16.vlgmr.msra.gmra.mrb[24].mxu1 %vm438_vm2, %v1024_v11 }
 0xaa7   : > { %v1065_v15 = vpop.f32.mrb[24].mxu1 }
 0xaa8   : > { %v1071_v18 = vadd.f32 %v1065_v15, %v912_v63  ;;  %v1359_v19 = vpop.f32.mrb[25].mxu1 }
 0xaa9   : > { %v1068_v20 = vpop.f32.mrb[26].mxu1 }
 0xaaa   : > { %v1079_v21 = vadd.f32 %v1238_v16, %v1071_v18  ;;  %v1360_v22 = vpop.f32.mrb[27].mxu1 }
 0xaac   : > { %1080 = vst.msk [vmem:[%s302_s29] sm:$0xff] %vm321_vm1, %v1079_v21 }
 0xaad   : > { %1612 = shalt.err (!%p1609_p0)
}
 0xaae   : > { %s1613_s15 = scalar_lea.hbm %s2099_s30, 128  ;;  %s1617_s17 = scalar_lea.hbm %s2155_s6, 256 }
 0xaaf   : > { %p1614_p4 = scmp.ne.s32.totalorder %s2099_s30, %s1613_s15  ;;  %p1618_p1 = scmp.lt.u32.totalorder %s2099_s30, %s2155_s6 }
 0xab0   : > { %p1619_p12 = scmp.lt.u32.totalorder %s1617_s17, %s1613_s15  ;;  %p1621_p11 = scmp.lt.u32.totalorder %s1613_s15, %s2099_s30 }
 0xab1   : > { %p1615_p2 = pnand %p1614_p4, %p1905_p10 }
 0xab2   : > { %p1620_p13 = por %p1619_p12, %p1618_p1 }
 0xab3   : > { %p1616_p8 = pneg %p1615_p2 }
 0xab4   : > { %p1622_p6 = por %p1621_p11, %p1620_p13 }
 0xab6   : > { %p1623_p3 = pnand %p1622_p6, %p1616_p8 }
 0xab8   : > { %1626 = shalt.err (!%p1623_p3)
}
 0xab9   : > { %1375 = dma.vmem_to_hbm [thread:$0]  (%p1905_p10), %s2101_s23, 128, %s2099_s30, %s1082_s26  }
 0xaba PF: > { %s2177_s21 = sld [smem:[#allocation17_spill]]  ;;  %s2178_s22 = sld [smem:[#allocation18_spill]] }
 0xabb   : > { %p2180_p7 = scmp.ge.s32.totalorder %s1689_s28, 2 }
 0xac0   : > { %s1108_s29 = sand.u32 1, %s2177_s21   ;;  %p2179_p5 = scmp.ne.s32.totalorder %s2178_s22, 0 }
 0xac1   : > { %s1109_s0 = scalar_lea.sflag [#allocation6], %s1108_s29 }
 0xac2   : > { %p1392_p9 = pnand %p2180_p7, %p2179_p5 }
 0xac4   : > { %1664 = dma.done.wait (!%p1392_p9), %s1109_s0, 128  }
 0xac5   : > { %1666 = vsyncadd (!%p1392_p9), %s1109_s0, 4294967168  ;;  %s25_s28 = sadd.s32 1, %s1689_s28   ;;  %s2181_s23 = smov %s1673_s24 }
 0xac6   : > { %p22_p0 = scmp.ge.s32.totalorder %s25_s28, 4   ;;  %s2182_s24 = smov %s1677_s25 }
 0xac7   : > { %s2183_s25 = smov %s1917_s18  ;;  %s2184_s26 = smov %s1685_s27 }
 0xac8   : > { %s2185_s27 = smov %s2187_s13  ;;  %24 = sbr.rel (!%p22_p0) target bundleno = 10 (0xa), region = 97 }
 0xacf   :  { %1114 = vsyncpa [#allocation5], 1 }
 0xad0   :  { %1116 = vsyncpa [#allocation5 + $0x1], 1 }
 0xad1   :  { %1117 = vsyncpa [#allocation8], 1 }
 0xad2   :  { %1118 = vsyncpa [#allocation11], 1 }
 0xad3   :  { %1119 = vsyncpa [#allocation6], 1 }
 0xad4   :  { %1121 = vsyncpa [#allocation6 + $0x1], 1 }

// kernel: tpu_custom_call.1
= control target key start
LH: loop header
LB: loop body
LE: loop exit
PB: predicated region body
PF: predicated region fallthrough
CT: control target
= control target key end

     0   :  { %s2149_s0 = inlined_call_operand.<no memory space> [shape: f32[1], index: 0, kind: input, shape index: {}]   ;;  %s2150_s1 = inlined_call_operand.hbm [shape: bf16[2,8,32], index: 1, kind: input, shape index: {}]   ;;  %s2151_s2 = inlined_call_operand.hbm [shape: bf16[32,32], index: 2, kind: input, shape index: {}]   ;;  %s2152_s3 = inlined_call_operand.hbm [shape: bf16[32,64], index: 3, kind: input, shape index: {}]   ;;  %s2153_s4 = inlined_call_operand.hbm [shape: bf16[32,32], index: 4, kind: input, shape index: {}]   ;;  %s2154_s5 = inlined_call_operand.vmem [shape: f32[1,32], index: 5, kind: input, shape index: {}]   ;;  %s2155_s6 = inlined_call_operand.hbm [shape: f32[2,8,32], index: 6, kind: output, shape index: {}]  }
   0x1   :  { %11 = sst [smem:[#allocation3]] %s2149_s0 }
   0x2   :  { %12 = vsyncpa [#allocation5], 0 }
   0x3   :  { %14 = vsyncpa [#allocation5 + $0x1], 0 }
   0x4   :  { %15 = vsyncpa [#allocation8], 0 }
   0x5   :  { %16 = vsyncpa [#allocation11], 0 }
   0x6   :  { %17 = vsyncpa [#allocation6], 0 }
   0x7   :  { %19 = vsyncpa [#allocation6 + $0x1], 0  ;;  %s1745_s23 = smov 0   ;;  %s1747_s24 = smov 0  }
   0x8   :  { %s1749_s25 = smov 0   ;;  %s1751_s26 = smov 0  }
   0x9   :  { %s1753_s27 = smov 0   ;;  %s1755_s28 = smov 0  }
   0xa LB: > { %2162 = sst [smem:[#allocation17_spill]] %s1669_s23  ;;  %s1205_s0 = sadd.s32 4294967295, %s1689_s28   ;;  %s1689_s28 = sphi %s1755_s28, %s25_s28   ;;  %s1685_s27 = sphi %s1753_s27, %s2185_s27   ;;  %s1681_s26 = sphi %s1751_s26, %s2184_s26   ;;  %s1677_s25 = sphi %s1749_s25, %s2183_s25   ;;  %s1673_s24 = sphi %s1747_s24, %s2182_s24   ;;  %s1669_s23 = sphi %s1745_s23, %s2181_s23  }
   0xb   : > { %s1206_s29 = sadd.s32 4294967294, %s1689_s28   ;;  %p59_p0 = scmp.ne.s32.totalorder %s1673_s24, %s1669_s23 }
   0xc   : > { %p1779_p1 = scmp.eq.s32.totalorder %s1205_s0, 0  ;;  %p1783_p2 = scmp.eq.s32.totalorder %s1205_s0, 1 }
   0xd   : > { %p175_p3 = scmp.eq.s32.totalorder %s1206_s29, 1  ;;  %p1207_p5 = scmp.ge.s32.totalorder %s1689_s28, 1 }
   0xe   : > { %s2163_s30 = scalar_select %p1779_p1, 1, 0 }
   0xf   : > { %s2164_s7 = scalar_select %p1783_p2, 1, 0 }
  0x10   : > { %p1789_p4 = por %p1779_p1, %p59_p0  ;;  %p1794_p6 = por %p175_p3, %p59_p0 }
  0x11   : > { %p182_p7 = scmp.lt.s32.totalorder %s1689_s28, 3  ;;  %s1691_s11 = smov [#allocation7]  }
  0x12   : > { %s2165_s8 = scalar_select %p1789_p4, 1, 0 }
  0x13   : > { %s2166_s9 = scalar_select %p1794_p6, 1, 0 }
  0x14   : > { %p1799_p8 = pnand %p1207_p5, %p182_p7  ;;  %s194_s12 = sshll.u32 %s1691_s11, 4  ;;  %s1803_s12 = int_to_ptr.vmem [resolvable:$true] %s194_s12 }
  0x15   : > { %2167 = sst [smem:[#allocation18_spill]] %s2166_s9  ;;  %s1692_s14 = smov [#allocation9]  }
  0x16   : > { %s2168_s10 = scalar_select %p1799_p8, 1, 0 }
  0x17   : > { %p1377_p9 = pneg %p1799_p8  ;;  %s207_s15 = sshll.u32 %s1692_s14, 4  ;;  %s1814_s15 = int_to_ptr.vmem [resolvable:$true] %s207_s15 }
  0x18   : > { %s1693_s16 = smov [#allocation10]   ;;  %s1485_s20 = scalar_lea.hbm %s2151_s2, 256 }
  0x19   : > { %p1810_p11 = pnand %p1377_p9, %p1779_p1  ;;  %s1816_s17 = sshll.u32 %s1693_s16, 4  ;;  %s221_s17 = int_to_ptr.vmem [resolvable:$true] %s1816_s17 }
  0x1a   : > { %p1486_p12 = scmp.ne.s32.totalorder %s2151_s2, %s1485_s20  ;;  %p1492_p5 = scmp.lt.u32.totalorder %s1485_s20, %s2151_s2 }
  0x1b   : > { %p1826_p13 = pneg %p1810_p11 }
  0x1d   : > { %p1488_p0 = pnand %p1826_p13, %p1486_p12 }
  0x1f   : > { %p1489_p3 = pneg %p1488_p0 }
  0x21   : > { %p1494_p7 = pnand %p1492_p5, %p1489_p3 }
  0x23   : > { %1497 = shalt.err (!%p1494_p7)
}
  0x24   : > { %s1498_s14 = scalar_lea.vmem %s1803_s12, 256  ;;  %p1506_p1 = scmp.lt.s32.totalorder %s1803_s12, %s1803_s12 }
  0x25   : > { %p1499_p9 = scmp.ne.s32.totalorder %s1803_s12, %s1498_s14  ;;  %p1507_p4 = scmp.lt.s32.totalorder %s1498_s14, %s1498_s14 }
  0x27   : > { %p1501_p10 = pnand %p1499_p9, %p1826_p13  ;;  %p1508_p12 = por %p1507_p4, %p1506_p1 }
  0x29   : > { %p1502_p6 = pneg %p1501_p10 }
  0x2b   : > { %p1509_p0 = pnand %p1508_p12, %p1502_p6 }
  0x2d   : > { %1512 = shalt.err (!%p1509_p0)
}
  0x2e   : > { %s1694_s16 = smov 64   ;;  %s1695_s18 = smov 4  }
  0x2f   : > { %1380 = dma.hbm_to_vmem [thread:$0]  (!%p1810_p11), %s2151_s2, 256, %s1803_s12, [#allocation8], %s1694_s16, %s1694_s16, %s1695_s18  }
  0x30   : > { %s1513_s29 = scalar_lea.hbm %s2152_s3, 256 }
  0x31   : > { %p1514_p1 = scmp.ne.s32.totalorder %s2152_s3, %s1513_s29  ;;  %p1520_p10 = scmp.lt.u32.totalorder %s1513_s29, %s2152_s3 }
  0x33   : > { %p1516_p4 = pnand %p1514_p1, %p1826_p13 }
  0x35   : > { %p1517_p6 = pneg %p1516_p4 }
  0x37   : > { %p1522_p3 = pnand %p1520_p10, %p1517_p6 }
  0x39   : > { %1525 = shalt.err (!%p1522_p3)
}
  0x3a   : > { %s1526_s12 = scalar_lea.vmem %s1814_s15, 256  ;;  %p1534_p12 = scmp.lt.s32.totalorder %s1814_s15, %s1814_s15 }
  0x3b   : > { %p1527_p5 = scmp.ne.s32.totalorder %s1814_s15, %s1526_s12  ;;  %p1535_p0 = scmp.lt.s32.totalorder %s1526_s12, %s1526_s12 }
  0x3d   : > { %p1529_p7 = pnand %p1527_p5, %p1826_p13  ;;  %p1536_p1 = por %p1535_p0, %p1534_p12 }
  0x3f   : > { %p1530_p9 = pneg %p1529_p7 }
  0x41   : > { %p1537_p4 = pnand %p1536_p1, %p1530_p9 }
  0x43   : > { %1540 = shalt.err (!%p1537_p4)
}
  0x44   : > { %1383 = dma.hbm_to_vmem [thread:$0]  (!%p1810_p11), %s2152_s3, 256, %s1814_s15, [#allocation8], %s1694_s16, %s1694_s16, %s1695_s18  }
  0x45   : > { %s1541_s21 = scalar_lea.hbm %s2153_s4, 256 }
  0x46   : > { %p1542_p6 = scmp.ne.s32.totalorder %s2153_s4, %s1541_s21  ;;  %p1548_p5 = scmp.lt.u32.totalorder %s1541_s21, %s2153_s4 }
  0x48   : > { %p1544_p10 = pnand %p1542_p6, %p1826_p13 }
  0x4a   : > { %p1545_p3 = pneg %p1544_p10 }
  0x4c   : > { %p1550_p7 = pnand %p1548_p5, %p1545_p3 }
  0x4e   : > { %1553 = shalt.err (!%p1550_p7)
}
  0x4f   : > { %s1554_s12 = scalar_lea.vmem %s221_s17, 256  ;;  %p1562_p1 = scmp.lt.s32.totalorder %s221_s17, %s221_s17 }
  0x50   : > { %p1555_p9 = scmp.ne.s32.totalorder %s221_s17, %s1554_s12  ;;  %p1563_p4 = scmp.lt.s32.totalorder %s1554_s12, %s1554_s12 }
  0x52   : > { %p1557_p12 = pnand %p1555_p9, %p1826_p13  ;;  %p1564_p8 = por %p1563_p4, %p1562_p1 }
  0x54   : > { %p1558_p0 = pneg %p1557_p12 }
  0x56   : > { %p1565_p2 = pnand %p1564_p8, %p1558_p0 }
  0x58   : > { %1568 = shalt.err (!%p1565_p2)
}
  0x59   : > { %1386 = dma.hbm_to_vmem [thread:$0]  (!%p1810_p11), %s2153_s4, 256, %s221_s17, [#allocation11], %s1694_s16, %s1694_s16, %s1695_s18  }
  0x5a   : > { %s46_s0 = sadd.s32 1, %s1677_s25  ;;  %s37_s13 = sadd.s32 1, %s1685_s27 }
  0x5b   : > { %p53_p2 = scmp.ne.s32.totalorder %s1677_s25, %s1673_s24  ;;  %p39_p8 = scmp.ge.s32.totalorder %s37_s13, 2 }
  0x5c   : > { %p54_p13 = scmp.eq.s32.totalorder %s1689_s28, 0  ;;  %p2171_p6 = scmp.ne.s32.totalorder %s2164_s7, 0 }
  0x5d   : > { %p1398_p3 = scmp.lt.s32.totalorder %s1689_s28, 2  ;;  %s2187_s13 = smov (%p39_p8, %s37_s13), 0 }
  0x5e   : > { %p1905_p10 = por %p2171_p6, %p53_p2  ;;  %p55_p5 = por %p54_p13, %p53_p2 }
  0x5f   : > { %s237_s19 = sand.u32 1, %s1677_s25   ;;  %s41_s20 = ssub.s32 %s1685_s27, %s2187_s13 }
  0x60   : > { %p44_p7 = scmp.eq.s32.totalorder %s41_s20, 0  ;;  %s1212_s17 = sshll.u32 %s237_s19, 2 }
  0x61   : > { %s1213_s16 = sshll.u32 %s1685_s27, 6  ;;  %s241_s29 = scalar_lea.vmem [#allocation4], %s1212_s17 }
  0x62   : > { %s1917_s18 = scalar_select %p44_p7, %s1677_s25, %s46_s0  }
  0x63   : > { %s1922_s7 = scalar_lea.hbm %s2150_s1, %s1213_s16  ;;  %s249_s11 = sshll.u32 %s241_s29, 4  ;;  %s1924_s11 = int_to_ptr.vmem [resolvable:$true] %s249_s11 }
  0x64   : > { %p1928_p11 = pnand %p1398_p3, %p55_p5  ;;  %s238_s12 = scalar_lea.sflag [#allocation5], %s237_s19 }
  0x65   : > { %s1569_s15 = scalar_lea.hbm %s1922_s7, 64  ;;  %s1574_s20 = scalar_lea.hbm %s2150_s1, 128 }
  0x66   : > { %p1570_p9 = scmp.ne.s32.totalorder %s1922_s7, %s1569_s15  ;;  %p1571_p12 = pneg %p1928_p11 }
  0x67   : > { %p1575_p4 = scmp.lt.u32.totalorder %s1922_s7, %s2150_s1  ;;  %p1576_p2 = scmp.lt.u32.totalorder %s1574_s20, %s1569_s15 }
  0x68   : > { %p1572_p0 = pnand %p1571_p12, %p1570_p9  ;;  %p1578_p13 = scmp.lt.u32.totalorder %s1569_s15, %s1922_s7 }
  0x69   : > { %p1577_p8 = por %p1576_p2, %p1575_p4 }
  0x6a   : > { %p1573_p1 = pneg %p1572_p0 }
  0x6b   : > { %p1579_p6 = por %p1578_p13, %p1577_p8 }
  0x6d   : > { %p1580_p3 = pnand %p1579_p6, %p1573_p1 }
  0x6f   : > { %1583 = shalt.err (!%p1580_p3)
}
  0x70   : > { %s1584_s19 = scalar_lea.vmem %s1924_s11, 64  ;;  %s1696_s21 = smov [#allocation4]  }
  0x71   : > { %p1585_p5 = scmp.ne.s32.totalorder %s1924_s11, %s1584_s19  ;;  %s1589_s22 = sshll.u32 %s1696_s21, 4  ;;  %s1590_s22 = int_to_ptr.vmem [resolvable:$false] %s1589_s22 }
  0x72   : > { %s1591_s29 = scalar_lea.vmem %s1590_s22, 128  ;;  %p1592_p0 = scmp.lt.s32.totalorder %s1924_s11, %s1590_s22 }
  0x73   : > { %p1587_p7 = pnand %p1585_p5, %p1571_p12  ;;  %p1593_p4 = scmp.lt.s32.totalorder %s1591_s29, %s1584_s19 }
  0x75   : > { %p1588_p9 = pneg %p1587_p7  ;;  %p1594_p2 = por %p1593_p4, %p1592_p0 }
  0x77   : > { %p1595_p8 = pnand %p1594_p2, %p1588_p9 }
  0x79   : > { %1598 = shalt.err (!%p1595_p8)
}
  0x7a   : > { %1390 = dma.hbm_to_vmem [thread:$0]  (!%p1928_p11), %s1922_s7, 64, %s1924_s11, %s238_s12  }
  0x7b   : > { %p2174_p1 = scmp.ne.s32.totalorder %s2168_s10, 0 }
  0x7c   : > { %s1960_s15 = sand.u32 (!%p2174_p1), 1, %s1673_s24   ;;  %p2175_p12 = scmp.ne.s32.totalorder (!%p2174_p1), %s2165_s8, 0 }
  0x7d   : > { %258 = sbr.rel (%p2174_p1) target bundleno = 2746 (0xaba), region = 40  ;;  %s1215_s23 = sshll.u32 (!%p2174_p1), %s1960_s15, 2 }
  0x7e   : > { %s261_s0 = scalar_lea.sflag (!%p2174_p1), [#allocation5], %s1960_s15  ;;  %s264_s20 = scalar_lea.vmem (!%p2174_p1), [#allocation4], %s1215_s23 }
  0x84   : > { %1652 = dma.done.wait (%p2175_p12), %s261_s0, 64  }
  0x85   : > { %1654 = vsyncadd (%p2175_p12), %s261_s0, 4294967232  ;;  %p2176_p13 = scmp.ne.s32.totalorder %s2163_s30, 0 }
  0x87   : > { %1656 = dma.done.wait (%p2176_p13), [#allocation8], 512  }
  0x88   : > { %1658 = vsyncadd (%p2176_p13), [#allocation8], 4294966784 }
  0x89   : > { %1660 = dma.done.wait (%p2176_p13), [#allocation11], 256  }
  0x8a   : > { %1662 = vsyncadd (%p2176_p13), [#allocation11], 4294967040  ;;  %v1697_v0 = vmov 0.0   ;;  %vm1698_vm0 = vmmov 0   ;;  %v1465_v1 = vld [vmem:[#allocation9] sm:$0xff]   ;;  %v1466_v2 = vld [vmem:[#allocation7] sm:$0xff]   ;;  %v425_v22 = vlaneseq }
  0x8b   : > { %1281 = vmatprep.subr.bf16.mxu1 %v1697_v0  ;;  %1273 = vmatprep.subr.bf16.mxu0 %v1697_v0  ;;  %v1467_v3 = vld [vmem:[#allocation9 + $0x8] sm:$0xff]   ;;  %v1468_v4 = vld [vmem:[#allocation7 + $0x8] sm:$0xff]   ;;  %vm321_vm1 = vcmask 261120   ;;  %s365_s30 = sld [smem:[#allocation3]]  ;;  %vm438_vm2 = vcmask 64512   ;;  %s1699_s8 = smov 120  }
  0x8c   : > { %1285 = vmatprep.mubr.msk.bf16.mxu1 %vm1698_vm0, %v1697_v0  ;;  %1277 = vmatprep.mubr.msk.bf16.mxu0 %vm1698_vm0, %v1697_v0  ;;  %v304_v5 = vld [vmem:[%s264_s20] sm:$0xf]  ;;  %v2010_v23 = vshrl.u32 %v425_v22, 7  ;;  %v2012_v24 = vand.u32 127, %v425_v22  ;;  %s1700_s10 = smov 96   ;;  %vm504_vm4 = vcmask 1043456  }
  0x8d   : > { %1282 = vmatpush3.bf16.msra.mxu1 %v1465_v1  ;;  %1274 = vmatpush3.bf16.msra.mxu0 %v1466_v2  ;;  %s1701_s7 = smov 88   ;;  %s1702_s11 = smov 112   ;;  %v433_v53 = vld [vmem:[#allocation10 + $0x4] sm:$0xf]  ;;  %v432_v59 = vld [vmem:[#allocation10] sm:$0xf] }
  0x8e   : > { %1283 = vmatprep.subr.bf16.mxu1 %v1697_v0  ;;  %1275 = vmatprep.subr.bf16.mxu0 %v1697_v0  ;;  %vm431_vm3 = vcmp.eq.s32.totalorder %v2010_v23, %v2012_v24  ;;  %v666_v54 = vsel %vm504_vm4, %v433_v53, 0  ;;  %v712_v62 = vsel %vm504_vm4, %v432_v59, 0  ;;  %s1703_s14 = smov 80   ;;  %s1704_s12 = smov 104  }
  0x8f   : > { %s1705_s17 = smov 72   ;;  %s1219_s16 = sshll.u32 %s1960_s15, 3 }
  0x90   : > { %s1240_s22 = sshll.u32 %s1681_s26, 7  ;;  %s302_s29 = scalar_lea.vmem [#allocation12], %s1219_s16 }
  0x91   : > { %1284 = vmatpush3.bf16.msra.mxu1 %v1467_v3  ;;  %1276 = vmatpush3.bf16.msra.mxu0 %v1468_v4  ;;  %v366_v6 = vstv %s365_s30  ;;  %s1096_s23 = sshll.u32 %s302_s29, 4  ;;  %s2099_s30 = scalar_lea.hbm %s2155_s6, %s1240_s22  ;;  %s2101_s23 = int_to_ptr.vmem [resolvable:$true] %s1096_s23 }
  0x92   : > { %1295 = vmatprep.subr.bf16.mxu1 %v1697_v0  ;;  %1289 = vmatprep.subr.bf16.mxu0 %v1697_v0  ;;  %s1082_s26 = scalar_lea.sflag [#allocation6], %s1960_s15 }
  0x94   : > { %1286 = vmatmul.mubr.msk.bf16.vlgmr.msra.gmra.mrb[0].mxu1 %vm321_vm1, %v304_v5  ;;  %1278 = vmatmul.mubr.msk.bf16.vlgmr.msra.gmra.mrb[0].mxu0 %vm321_vm1, %v304_v5 }
  0x95   : > { %1297 = vmatprep.mubr.msk.bf16.mxu1 %vm1698_vm0, %v1697_v0  ;;  %1291 = vmatprep.mubr.msk.bf16.mxu0 %vm1698_vm0, %v1697_v0 }
 0x167   : > { %v418_v7 = vpop.f32.mrb[0].mxu1  ;;  %v359_v10 = vpop.f32.mrb[0].mxu0 }
 0x168   : > { %v1992_v8 = vpack.c.bf16 %v418_v7, %v418_v7  ;;  %v1287_v9 = vpop.f32.mrb[1].mxu1  ;;  %v367_v12 = vmul.f32 %v366_v6, %v359_v10  ;;  %v1279_v13 = vpop.f32.mrb[1].mxu0 }
 0x169   : > { %v421_v11 = vpop.f32.mrb[2].mxu1  ;;  %v362_v16 = vpop.f32.mrb[2].mxu0 }
 0x16a   : > { %552 = vrot.lane.b32.xlu0 %v1992_v8, %s1699_s8  ;;  %v1288_v14 = vpop.f32.mrb[3].mxu1  ;;  %v443_v15 = vsel %vm438_vm2, %v1992_v8, 0  ;;  %v1997_v17 = vpack.c.bf16 %v367_v12, %v367_v12  ;;  %v1280_v18 = vpop.f32.mrb[3].mxu0 }
 0x16b   : > { %1290 = vmatpush3.bf16.xpose.msra.mxu0 %v443_v15 }
 0x16c   : > { %1301 = vmatprep.subr.bf16.mxu0 %v1697_v0 }
 0x16e   : > { %550 = vrot.lane.b32.xlu0 %v1997_v17, %s1699_s8  ;;  %s1599_s8 = scalar_lea.vmem %s2101_s23, 128 }
 0x16f   : > { %p1600_p11 = scmp.ne.s32.totalorder %s2101_s23, %s1599_s8 }
 0x171   : > { %p1601_p6 = pnand %p1600_p11, %p1905_p10 }
 0x172   : > { %1292 = vmatmul.mubr.msk.bf16.vlgmr.msra.gmra.mrb[4].mxu0 %vm438_vm2, %v1997_v17 }
 0x173   : > { %1303 = vmatprep.mubr.msk.bf16.mxu0 %vm1698_vm0, %v1697_v0  ;;  %p1602_p3 = pneg %p1601_p6 }
 0x1dc   : > { %v553_v19 = vpop.permute.xlu0 %552 }
 0x1dd   : > { %v558_v20 = vsel %vm438_vm2, %v553_v19, 0 }
 0x1de   : > { %1302 = vmatpush3.bf16.xpose.msra.mxu0 %v558_v20 }
 0x1df   : > { %1313 = vmatprep.subr.bf16.mxu0 %v1697_v0 }
 0x1e0   : > { %v551_v21 = vpop.permute.xlu0 %550 }
 0x1e5   : > { %1304 = vmatmul.mubr.msk.bf16.vlgmr.msra.gmra.mrb[8].mxu0 %vm438_vm2, %v551_v21 }
 0x1e6   : > { %1315 = vmatprep.mubr.msk.bf16.mxu0 %vm1698_vm0, %v1697_v0  ;;  %1314 = vmatpush3.bf16.msra.mxu0 %v666_v54 }
 0x1e7   : > { %1325 = vmatprep.subr.bf16.mxu0 %v1697_v0 }
 0x245   : > { %v479_v25 = vpop.f32.mrb[4].mxu0 }
 0x246   : > { %v485_v26 = vsel %vm431_vm3, -3.4028235e+38, %v479_v25  ;;  %v1293_v27 = vpop.f32.mrb[5].mxu0 }
 0x247   : > { %v482_v28 = vpop.f32.mrb[6].mxu0  ;;  %v486_v29 = vsel %vm438_vm2, %v485_v26, -inf }
 0x248   : > { %487 = vmax.xlane.f32.xlu1 %v486_v29  ;;  %v1294_v30 = vpop.f32.mrb[7].mxu0 }
 0x2b8   : > { %v594_v31 = vpop.f32.mrb[8].mxu0 }
 0x2b9   : > { %v600_v32 = vsel %vm431_vm3, -3.4028235e+38, %v594_v31  ;;  %v1305_v33 = vpop.f32.mrb[9].mxu0 }
 0x2ba   : > { %v597_v34 = vpop.f32.mrb[10].mxu0  ;;  %v601_v35 = vsel %vm438_vm2, %v600_v32, -inf }
 0x2bb   : > { %602 = vmax.xlane.f32.xlu1 %v601_v35  ;;  %v1306_v36 = vpop.f32.mrb[11].mxu0 }
 0x2cc   : > { %499 = vrot.lane.b32.xlu1 %v1992_v8, %s1700_s10  ;;  %s1706_s10 = smov [#allocation12]  }
 0x2d5   : > { %v488_v37 = vpop.xlane.xlu1 %487 }
 0x2d6   : > { %v489_v38 = vsub.f32 %v485_v26, %v488_v37 }
 0x2d8   : > { %v490_v39 = vmul.f32 1.442695, %v489_v38 }
 0x2da   : > { %1469 = vpow2.f32 %v490_v39 }
 0x2e4   : > { %v1470_v40 = vpop.eup %1469 }
 0x2e5   : > { %v492_v41 = vsel %vm438_vm2, %v1470_v40, 0.0 }
 0x2e6   : > { %493 = vadd.xlane.f32.xlu0 %v492_v41 }
 0x348   : > { %v603_v42 = vpop.xlane.xlu1 %602 }
 0x349   : > { %v604_v43 = vsub.f32 %v600_v32, %v603_v42 }
 0x34b   : > { %v605_v44 = vmul.f32 1.442695, %v604_v43 }
 0x34c   : > { %v500_v45 = vpop.permute.xlu1 %499 }
 0x34d   : > { %1471 = vpow2.f32 %v605_v44  ;;  %v506_v46 = vsel %vm504_vm4, %v500_v45, 0  ;;  %v434_v45 = vld [vmem:[#allocation10 + $0x8] sm:$0xf] }
 0x34e   : > { %1296 = vmatpush3.bf16.msra.mxu1 %v506_v46  ;;  %v870_v46 = vsel %vm504_vm4, %v434_v45, 0 }
 0x34f   : > { %1307 = vmatprep.subr.bf16.mxu1 %v1697_v0 }
 0x357   : > { %v1472_v47 = vpop.eup %1471 }
 0x358   : > { %v607_v48 = vsel %vm438_vm2, %v1472_v47, 0.0 }
 0x359   : > { %608 = vadd.xlane.f32.xlu1 %v607_v48 }
 0x36a   : > { %613 = vrot.lane.b32.xlu1 %v1992_v8, %s1701_s7  ;;  %s1603_s7 = sshll.u32 %s1706_s10, 4  ;;  %s1604_s7 = int_to_ptr.vmem [resolvable:$false] %s1603_s7 }
 0x36b   : > { %p1606_p5 = scmp.lt.s32.totalorder %s2101_s23, %s1604_s7 }
 0x36e   : > { %756 = vrot.lane.b32.xlu1 %v1992_v8, %s1702_s11 }
 0x372   : > { %754 = vrot.lane.b32.xlu1 %v1997_v17, %s1702_s11  ;;  %s1605_s11 = scalar_lea.vmem %s1604_s7, 256 }
 0x373   : > { %v494_v49 = vpop.xlane.xlu0 %493  ;;  %p1607_p7 = scmp.lt.s32.totalorder %s1605_s11, %s1599_s8 }
 0x374   : > { %1473 = vrcp.f32 %v494_v49 }
 0x375   : > { %p1608_p9 = por %p1607_p7, %p1606_p5 }
 0x377   : > { %p1609_p0 = pnand %p1608_p9, %p1602_p3 }
 0x37e   : > { %v1474_v50 = vpop.eup %1473 }
 0x37f   : > { %v496_v51 = vmul.f32 %v1474_v50, %v1470_v40 }
 0x381   : > { %v497_v52 = vpack.c.bf16 %v496_v51, %v496_v51 }
 0x383   : > { %1298 = vmatmul.mubr.msk.bf16.vlgmr.msra.gmra.mrb[4].mxu1 %vm438_vm2, %v497_v52 }
 0x384   : > { %1309 = vmatprep.mubr.msk.bf16.mxu1 %vm1698_vm0, %v1697_v0 }
 0x3e6   : > { %v609_v55 = vpop.xlane.xlu1 %608 }
 0x3e7   : > { %1475 = vrcp.f32 %v609_v55 }
 0x3ea   : > { %v614_v56 = vpop.permute.xlu1 %613 }
 0x3eb   : > { %v619_v57 = vsel %vm504_vm4, %v614_v56, 0 }
 0x3ec   : > { %1308 = vmatpush3.bf16.msra.mxu1 %v619_v57 }
 0x3ed   : > { %1319 = vmatprep.subr.bf16.mxu1 %v1697_v0 }
 0x3ee   : > { %v757_v5 = vpop.permute.xlu1 %756 }
 0x3ef   : > { %v762_v11 = vsel %vm438_vm2, %v757_v5, 0 }
 0x3f1   : > { %v1476_v58 = vpop.eup %1475 }
 0x3f2   : > { %v611_v60 = vmul.f32 %v1476_v58, %v1472_v47  ;;  %v755_v13 = vpop.permute.xlu1 %754 }
 0x3f4   : > { %v612_v61 = vpack.c.bf16 %v611_v60, %v611_v60 }
 0x3f6   : > { %1310 = vmatmul.mubr.msk.bf16.vlgmr.msra.gmra.mrb[8].mxu1 %vm438_vm2, %v612_v61 }
 0x3f7   : > { %1320 = vmatpush3.bf16.msra.mxu1 %v712_v62  ;;  %1321 = vmatprep.mubr.msk.bf16.mxu1 %vm1698_vm0, %v1697_v0 }
 0x3f8   : > { %1331 = vmatprep.subr.bf16.mxu1 %v1697_v0 }
 0x456   : > { %v542_v63 = vpop.f32.mrb[4].mxu1 }
 0x457   : > { %v548_v1 = vpack.c.bf16 %v542_v63, %v542_v63  ;;  %v1299_v2 = vpop.f32.mrb[5].mxu1 }
 0x458   : > { %v545_v3 = vpop.f32.mrb[6].mxu1 }
 0x459   : > { %v1300_v4 = vpop.f32.mrb[7].mxu1  ;;  %1322 = vmatmul.mubr.msk.bf16.vlgmr.msra.gmra.mrb[12].mxu1 %vm438_vm2, %v548_v1 }
 0x45a   : > { %1333 = vmatprep.mubr.msk.bf16.mxu1 %vm1698_vm0, %v1697_v0 }
 0x4c9   : > { %v655_v6 = vpop.f32.mrb[8].mxu1 }
 0x4ca   : > { %v661_v7 = vpack.c.bf16 %v655_v6, %v655_v6  ;;  %v1311_v9 = vpop.f32.mrb[9].mxu1 }
 0x4cb   : > { %v658_v10 = vpop.f32.mrb[10].mxu1 }
 0x4cc   : > { %v1312_v12 = vpop.f32.mrb[11].mxu1  ;;  %1316 = vmatmul.mubr.msk.bf16.vlgmr.msra.gmra.mrb[12].mxu0 %vm438_vm2, %v661_v7 }
 0x4cd   : > { %1326 = vmatpush3.bf16.xpose.msra.mxu0 %v762_v11  ;;  %1327 = vmatprep.mubr.msk.bf16.mxu0 %vm1698_vm0, %v1697_v0 }
 0x4ce   : > { %1337 = vmatprep.subr.bf16.mxu0 %v1697_v0 }
 0x4d4   : > { %1328 = vmatmul.mubr.msk.bf16.vlgmr.msra.gmra.mrb[16].mxu0 %vm438_vm2, %v755_v13 }
 0x4d5   : > { %1339 = vmatprep.mubr.msk.bf16.mxu0 %vm1698_vm0, %v1697_v0  ;;  %1338 = vmatpush3.bf16.msra.mxu0 %v870_v46 }
 0x4d6   : > { %1349 = vmatprep.subr.bf16.mxu0 %v1697_v0 }
 0x52c   : > { %v748_v14 = vpop.f32.mrb[12].mxu1 }
 0x52d   : > { %v1323_v15 = vpop.f32.mrb[13].mxu1 }
 0x52e   : > { %v751_v16 = vpop.f32.mrb[14].mxu1 }
 0x52f   : > { %v1324_v18 = vpop.f32.mrb[15].mxu1  ;;  %v1238_v16 = vld [vmem:[%s2154_s5] ss:$0 sm:$0xff] }
 0x59f   : > { %v702_v19 = vpop.f32.mrb[12].mxu0 }
 0x5a0   : > { %v2055_v20 = vadd.f32 %v748_v14, %v702_v19  ;;  %v1317_v21 = vpop.f32.mrb[13].mxu0 }
 0x5a1   : > { %v705_v22 = vpop.f32.mrb[14].mxu0 }
 0x5a2   : > { %v1318_v25 = vpop.f32.mrb[15].mxu0 }
 0x5a7   : > { %v798_v26 = vpop.f32.mrb[16].mxu0 }
 0x5a8   : > { %v804_v27 = vsel %vm431_vm3, -3.4028235e+38, %v798_v26  ;;  %v1329_v28 = vpop.f32.mrb[17].mxu0 }
 0x5a9   : > { %v801_v29 = vpop.f32.mrb[18].mxu0  ;;  %v805_v30 = vsel %vm438_vm2, %v804_v27, -inf }
 0x5aa   : > { %806 = vmax.xlane.f32.xlu0 %v805_v30  ;;  %v1330_v31 = vpop.f32.mrb[19].mxu0 }
 0x5c0   : > { %817 = vrot.lane.b32.xlu0 %v1992_v8, %s1703_s14 }
 0x5c4   : > { %915 = vrot.lane.b32.xlu0 %v1992_v8, %s1704_s12 }
 0x5c8   : > { %913 = vrot.lane.b32.xlu0 %v1997_v17, %s1704_s12 }
 0x637   : > { %v807_v32 = vpop.xlane.xlu0 %806 }
 0x638   : > { %v808_v33 = vsub.f32 %v804_v27, %v807_v32 }
 0x63a   : > { %v809_v34 = vmul.f32 1.442695, %v808_v33 }
 0x63b   : > { %v818_v35 = vpop.permute.xlu0 %817 }
 0x63c   : > { %1477 = vpow2.f32 %v809_v34  ;;  %v823_v36 = vsel %vm504_vm4, %v818_v35, 0 }
 0x63d   : > { %1332 = vmatpush3.bf16.msra.mxu1 %v823_v36 }
 0x63e   : > { %1343 = vmatprep.subr.bf16.mxu1 %v1697_v0 }
 0x63f   : > { %v916_v42 = vpop.permute.xlu0 %915 }
 0x640   : > { %v921_v43 = vsel %vm438_vm2, %v916_v42, 0 }
 0x643   : > { %v914_v44 = vpop.permute.xlu0 %913 }
 0x646   : > { %v1478_v37 = vpop.eup %1477 }
 0x647   : > { %v811_v38 = vsel %vm438_vm2, %v1478_v37, 0.0 }
 0x648   : > { %812 = vadd.xlane.f32.xlu1 %v811_v38 }
 0x6d5   : > { %v813_v39 = vpop.xlane.xlu1 %812 }
 0x6d6   : > { %1479 = vrcp.f32 %v813_v39 }
 0x6e0   : > { %v1480_v40 = vpop.eup %1479 }
 0x6e1   : > { %v815_v41 = vmul.f32 %v1480_v40, %v1478_v37 }
 0x6e3   : > { %v816_v17 = vpack.c.bf16 %v815_v41, %v815_v41 }
 0x6e5   : > { %1334 = vmatmul.mubr.msk.bf16.vlgmr.msra.gmra.mrb[16].mxu1 %vm438_vm2, %v816_v17 }
 0x6e6   : > { %1344 = vmatpush3.bf16.xpose.msra.mxu1 %v921_v43  ;;  %1345 = vmatprep.mubr.msk.bf16.mxu1 %vm1698_vm0, %v1697_v0 }
 0x6e7   : > { %1355 = vmatprep.subr.bf16.mxu1 %v1697_v0 }
 0x6ed   : > { %1346 = vmatmul.mubr.msk.bf16.vlgmr.msra.gmra.mrb[20].mxu1 %vm438_vm2, %v914_v44 }
 0x6ee   : > { %1357 = vmatprep.mubr.msk.bf16.mxu1 %vm1698_vm0, %v1697_v0 }
 0x7b8   : > { %v859_v47 = vpop.f32.mrb[16].mxu1 }
 0x7b9   : > { %v865_v48 = vpack.c.bf16 %v859_v47, %v859_v47  ;;  %v1335_v49 = vpop.f32.mrb[17].mxu1 }
 0x7ba   : > { %v862_v50 = vpop.f32.mrb[18].mxu1 }
 0x7bb   : > { %v1336_v51 = vpop.f32.mrb[19].mxu1  ;;  %1340 = vmatmul.mubr.msk.bf16.vlgmr.msra.gmra.mrb[20].mxu0 %vm438_vm2, %v865_v48 }
 0x7bc   : > { %1351 = vmatprep.mubr.msk.bf16.mxu0 %vm1698_vm0, %v1697_v0  ;;  %v435_v0 = vld [vmem:[#allocation10 + $0xc] sm:$0xf] }
 0x7bd   : > { %v1029_v23 = vsel %vm504_vm4, %v435_v0, 0 }
 0x7be   : > { %1356 = vmatpush3.bf16.msra.mxu1 %v1029_v23 }
 0x7c0   : > { %v957_v52 = vpop.f32.mrb[20].mxu1 }
 0x7c1   : > { %v963_v53 = vsel %vm431_vm3, -3.4028235e+38, %v957_v52  ;;  %v1347_v54 = vpop.f32.mrb[21].mxu1 }
 0x7c2   : > { %v960_v55 = vpop.f32.mrb[22].mxu1  ;;  %v964_v56 = vsel %vm438_vm2, %v963_v53, -inf }
 0x7c3   : > { %965 = vmax.xlane.f32.xlu0 %v964_v56  ;;  %v1348_v57 = vpop.f32.mrb[23].mxu1 }
 0x850   : > { %v966_v58 = vpop.xlane.xlu0 %965 }
 0x851   : > { %v967_v59 = vsub.f32 %v963_v53, %v966_v58 }
 0x853   : > { %v968_v60 = vmul.f32 1.442695, %v967_v59 }
 0x855   : > { %1481 = vpow2.f32 %v968_v60 }
 0x85f   : > { %v1482_v61 = vpop.eup %1481 }
 0x860   : > { %v970_v62 = vsel %vm438_vm2, %v1482_v61, 0.0 }
 0x861   : > { %971 = vadd.xlane.f32.xlu1 %v970_v62 }
 0x872   : > { %976 = vrot.lane.b32.xlu1 %v1992_v8, %s1705_s17 }
 0x88e   : > { %v906_v24 = vpop.f32.mrb[20].mxu0 }
 0x88f   : > { %v912_v63 = vadd.f32 %v906_v24, %v2055_v20  ;;  %v1341_v1 = vpop.f32.mrb[21].mxu0 }
 0x890   : > { %v909_v2 = vpop.f32.mrb[22].mxu0 }
 0x891   : > { %v1342_v3 = vpop.f32.mrb[23].mxu0 }
 0x8ee   : > { %v972_v4 = vpop.xlane.xlu1 %971 }
 0x8ef   : > { %1483 = vrcp.f32 %v972_v4 }
 0x8f2   : > { %v977_v5 = vpop.permute.xlu1 %976 }
 0x8f3   : > { %v982_v6 = vsel %vm504_vm4, %v977_v5, 0 }
 0x8f4   : > { %1350 = vmatpush3.bf16.msra.mxu0 %v982_v6 }
 0x8f9   : > { %v1484_v7 = vpop.eup %1483 }
 0x8fa   : > { %v974_v8 = vmul.f32 %v1484_v7, %v1482_v61 }
 0x8fc   : > { %v975_v9 = vpack.c.bf16 %v974_v8, %v974_v8 }
 0x8fe   : > { %1352 = vmatmul.mubr.msk.bf16.vlgmr.msra.gmra.mrb[24].mxu0 %vm438_vm2, %v975_v9 }
 0x9d1   : > { %v1018_v10 = vpop.f32.mrb[24].mxu0 }
 0x9d2   : > { %v1024_v11 = vpack.c.bf16 %v1018_v10, %v1018_v10  ;;  %v1353_v12 = vpop.f32.mrb[25].mxu0 }
 0x9d3   : > { %v1021_v13 = vpop.f32.mrb[26].mxu0 }
 0x9d4   : > { %v1354_v14 = vpop.f32.mrb[27].mxu0  ;;  %1358 = vmatmul.mubr.msk.bf16.vlgmr.msra.gmra.mrb[24].mxu1 %vm438_vm2, %v1024_v11 }
 0xaa7   : > { %v1065_v15 = vpop.f32.mrb[24].mxu1 }
 0xaa8   : > { %v1071_v18 = vadd.f32 %v1065_v15, %v912_v63  ;;  %v1359_v19 = vpop.f32.mrb[25].mxu1 }
 0xaa9   : > { %v1068_v20 = vpop.f32.mrb[26].mxu1 }
 0xaaa   : > { %v1079_v21 = vadd.f32 %v1238_v16, %v1071_v18  ;;  %v1360_v22 = vpop.f32.mrb[27].mxu1 }
 0xaac   : > { %1080 = vst.msk [vmem:[%s302_s29] sm:$0xff] %vm321_vm1, %v1079_v21 }
 0xaad   : > { %1612 = shalt.err (!%p1609_p0)
}
 0xaae   : > { %s1613_s15 = scalar_lea.hbm %s2099_s30, 128  ;;  %s1617_s17 = scalar_lea.hbm %s2155_s6, 256 }
 0xaaf   : > { %p1614_p4 = scmp.ne.s32.totalorder %s2099_s30, %s1613_s15  ;;  %p1618_p1 = scmp.lt.u32.totalorder %s2099_s30, %s2155_s6 }
 0xab0   : > { %p1619_p12 = scmp.lt.u32.totalorder %s1617_s17, %s1613_s15  ;;  %p1621_p11 = scmp.lt.u32.totalorder %s1613_s15, %s2099_s30 }
 0xab1   : > { %p1615_p2 = pnand %p1614_p4, %p1905_p10 }
 0xab2   : > { %p1620_p13 = por %p1619_p12, %p1618_p1 }
 0xab3   : > { %p1616_p8 = pneg %p1615_p2 }
 0xab4   : > { %p1622_p6 = por %p1621_p11, %p1620_p13 }
 0xab6   : > { %p1623_p3 = pnand %p1622_p6, %p1616_p8 }
 0xab8   : > { %1626 = shalt.err (!%p1623_p3)
}
 0xab9   : > { %1375 = dma.vmem_to_hbm [thread:$0]  (%p1905_p10), %s2101_s23, 128, %s2099_s30, %s1082_s26  }
 0xaba PF: > { %s2177_s21 = sld [smem:[#allocation17_spill]]  ;;  %s2178_s22 = sld [smem:[#allocation18_spill]] }
 0xabb   : > { %p2180_p7 = scmp.ge.s32.totalorder %s1689_s28, 2 }
 0xac0   : > { %s1108_s29 = sand.u32 1, %s2177_s21   ;;  %p2179_p5 = scmp.ne.s32.totalorder %s2178_s22, 0 }
 0xac1   : > { %s1109_s0 = scalar_lea.sflag [#allocation6], %s1108_s29 }
 0xac2   : > { %p1392_p9 = pnand %p2180_p7, %p2179_p5 }
 0xac4   : > { %1664 = dma.done.wait (!%p1392_p9), %s1109_s0, 128  }
 0xac5   : > { %1666 = vsyncadd (!%p1392_p9), %s1109_s0, 4294967168  ;;  %s25_s28 = sadd.s32 1, %s1689_s28   ;;  %s2181_s23 = smov %s1673_s24 }
 0xac6   : > { %p22_p0 = scmp.ge.s32.totalorder %s25_s28, 4   ;;  %s2182_s24 = smov %s1677_s25 }
 0xac7   : > { %s2183_s25 = smov %s1917_s18  ;;  %s2184_s26 = smov %s1685_s27 }
 0xac8   : > { %s2185_s27 = smov %s2187_s13  ;;  %24 = sbr.rel (!%p22_p0) target bundleno = 10 (0xa), region = 97 }
 0xacf   :  { %1114 = vsyncpa [#allocation5], 1 }
 0xad0   :  { %1116 = vsyncpa [#allocation5 + $0x1], 1 }
 0xad1   :  { %1117 = vsyncpa [#allocation8], 1 }
 0xad2   :  { %1118 = vsyncpa [#allocation11], 1 }
 0xad3   :  { %1119 = vsyncpa [#allocation6], 1 }
 0xad4   :  { %1121 = vsyncpa [#allocation6 + $0x1], 1 }

</bundles_post_ra>
